<compile_context>
chip_gen: v7x
topology: tpu7x:2x2x1
jax: 0.10.0
libtpu: 0.0.40
codegen_flags: <defaults>
</compile_context>

<pallas_src>
import functools

import jax
import jax.numpy as jnp
from jax.experimental import pallas as pl
from jax.experimental.pallas import tpu as pltpu


_MXU_DTYPE = jnp.bfloat16          # MXU operand dtype (accumulate stays f32)
_ACT_DTYPE = jnp.bfloat16          # conv activations stored in HBM as bf16
_VMEM_LIMIT = 32 * 1024 * 1024


# ------------------------------ tiling helper --------------------------------

def _pick_blocks(M, max_tile):
    """Column tiling over M: full-extent or 128-aligned blocks, no jnp.pad."""
    if M <= max_tile:
        # Prefer two lane-dense blocks when that is free (v7x has 2 TCs).
        if M >= 2048 and M % 256 == 0:
            return M // 2, 2
        return M, 1                               # single full-extent block
    # Look for a 128-aligned tile that divides M exactly (no ragged block).
    for bm in range(max_tile, 511, -128):
        if M % bm == 0:
            return bm, M // bm
    # Ragged last block: correct (columns are independent; Pallas masks the
    # out-of-bounds part of the final tile), just slightly less efficient.
    return 2048, pl.cdiv(M, 2048)


# ----------------------------- Pallas kernels ---------------------------------

def _conv_kernel(w_ref, p_ref, o_ref):
    """o[N, bm] = tanh(W[N,K] @ P[K,bm]); bf16 in/out, f32 accumulate."""
    y = jnp.dot(w_ref[...], p_ref[...], preferred_element_type=jnp.float32)
    o_ref[...] = jnp.tanh(y).astype(o_ref.dtype)


def _conv_pool_kernel(w_ref, b_ref, p_ref, o_ref):
    """Fused conv + bias + tanh + 2x2 sum-pool via quadrant decomposition.

    p_ref: (4, K, bm) -- one im2col patch set per pooling quadrant.
    o[N, bm] = sum_q tanh(W @ P_q + b); the 0.25 avg-pool scale is folded
    into the next layer's weights outside the kernel.
    """
    w = w_ref[...]
    b = b_ref[...]
    acc = None
    for q in range(4):
        y = jnp.dot(w, p_ref[q], preferred_element_type=jnp.float32)
        y = jnp.tanh(y + b)
        acc = y if acc is None else acc + y
    o_ref[...] = acc.astype(o_ref.dtype)


def _tail_kernel(p_ref, w5_ref, b5_ref, w1_ref, b1_ref, w2_ref, b2_ref, o_ref):
    """Fused c5 -> tanh -> l1 -> tanh -> l2; intermediates never leave VMEM."""
    h = jnp.dot(w5_ref[...], p_ref[...], preferred_element_type=jnp.float32)
    h = jnp.tanh(h + b5_ref[...])                                    # (120, bb)
    h = jnp.dot(w1_ref[...], h.astype(w1_ref.dtype),
                preferred_element_type=jnp.float32)
    h = jnp.tanh(h + b1_ref[...])                                    # (84, bb)
    o_ref[...] = (jnp.dot(w2_ref[...], h.astype(w2_ref.dtype),
                          preferred_element_type=jnp.float32)
                  + b2_ref[...])                                     # (10, bb)


# ------------------------------ kernel wrappers --------------------------------

def conv_tanh(w_mat, patches, *, max_tile=4096):
    """tanh(W @ P): W (N,K), P (K,M) bf16 -> (N,M) bf16; gridded over M."""
    N, K = w_mat.shape
    M = patches.shape[1]
    bm, n_blocks = _pick_blocks(M, max_tile)
    return pl.pallas_call(
        _conv_kernel,
        out_shape=jax.ShapeDtypeStruct((N, M), _ACT_DTYPE),
        grid=(n_blocks,),
        in_specs=[pl.BlockSpec((N, K), lambda i: (0, 0)),      # resident weights
                  pl.BlockSpec((K, bm), lambda i: (0, i))],    # streamed patches
        out_specs=pl.BlockSpec((N, bm), lambda i: (0, i)),
        compiler_params=pltpu.CompilerParams(
            dimension_semantics=("parallel",),
            vmem_limit_bytes=_VMEM_LIMIT),
    )(w_mat.astype(_MXU_DTYPE), patches.astype(_MXU_DTYPE))


def conv_pool_tanh(w_mat, b, qpatches, *, max_tile=2048):
    """sum_q tanh(W @ P_q + b): W (N,K), qpatches (4,K,Mp) -> (N,Mp) bf16."""
    N, K = w_mat.shape
    M = qpatches.shape[2]
    bm, n_blocks = _pick_blocks(M, max_tile)
    return pl.pallas_call(
        _conv_pool_kernel,
        out_shape=jax.ShapeDtypeStruct((N, M), _ACT_DTYPE),
        grid=(n_blocks,),
        in_specs=[pl.BlockSpec((N, K), lambda i: (0, 0)),      # resident weights
                  pl.BlockSpec((N, 1), lambda i: (0, 0)),      # resident bias
                  pl.BlockSpec((4, K, bm), lambda i: (0, 0, i))],
        out_specs=pl.BlockSpec((N, bm), lambda i: (0, i)),
        compiler_params=pltpu.CompilerParams(
            dimension_semantics=("parallel",),
            vmem_limit_bytes=_VMEM_LIMIT),
    )(w_mat.astype(_MXU_DTYPE), b.astype(jnp.float32).reshape(N, 1),
      qpatches.astype(_MXU_DTYPE))


def fused_tail(patches, params, *, max_tile=2048):
    """patches (400, B) -> logits (10, B) f32; one kernel for c5 + l1 + l2.

    s4's 0.25 avg-pool scale is folded into c5's weights here; all matmul
    operands are bf16, bias/tanh/accumulate in f32.
    """
    B = patches.shape[1]
    bm, n_blocks = _pick_blocks(B, max_tile)
    resident = lambda s: pl.BlockSpec(s, lambda i: (0, 0))
    return pl.pallas_call(
        _tail_kernel,
        out_shape=jax.ShapeDtypeStruct((10, B), jnp.float32),
        grid=(n_blocks,),
        in_specs=[pl.BlockSpec((400, bm), lambda i: (0, i)),
                  resident((120, 400)), resident((120, 1)),
                  resident((84, 120)), resident((84, 1)),
                  resident((10, 84)), resident((10, 1))],
        out_specs=pl.BlockSpec((10, bm), lambda i: (0, i)),
        compiler_params=pltpu.CompilerParams(
            dimension_semantics=("parallel",),
            vmem_limit_bytes=_VMEM_LIMIT),
    )(patches.astype(_MXU_DTYPE),
      (0.25 * params["c5_wm"]).astype(_MXU_DTYPE),
      params["c5_b"].astype(jnp.float32).reshape(120, 1),
      params["l1_w"].astype(_MXU_DTYPE),
      params["l1_b"].astype(jnp.float32).reshape(84, 1),
      params["l2_w"].astype(_MXU_DTYPE),
      params["l2_b"].astype(jnp.float32).reshape(10, 1))


# --------------------------------- JAX glue ------------------------------------

def im2col_cf(x, k, pad=0):
    """x:(C,B,H,W) -> patches (C*k*k, B*OH*OW); row order (c, kh, kw)."""
    if pad:
        x = jnp.pad(x, ((0, 0), (0, 0), (pad, pad), (pad, pad)))
    C, B, H, W = x.shape
    OH, OW = H - k + 1, W - k + 1
    cols = [x[:, :, kh:kh + OH, kw:kw + OW] for kh in range(k) for kw in range(k)]
    p = jnp.stack(cols, axis=1)                   # (C, k*k, B, OH, OW)
    return p.reshape(C * k * k, B * OH * OW), OH, OW


def im2col_pool_cf(x, k):
    """Quadrant im2col for a fused conv + 2x2/2 avg-pool.

    x:(C,B,H,W) -> (4, C*k*k, B*PH*PW) where quadrant q=(di,dj) holds the
    patches of the stride-2 conv whose outputs are the (2i+di, 2j+dj) conv
    positions, i.e. exactly the four contributors to each pooled output.
    """
    C, B, H, W = x.shape
    OH, OW = H - k + 1, W - k + 1
    PH, PW = OH // 2, OW // 2
    quads = []
    for di in range(2):
        for dj in range(2):
            cols = [x[:, :,
                      di + kh: di + kh + 2 * PH - 1: 2,
                      dj + kw: dj + kw + 2 * PW - 1: 2]
                    for kh in range(k) for kw in range(k)]
            p = jnp.stack(cols, axis=1)           # (C, k*k, B, PH, PW)
            quads.append(p.reshape(C * k * k, B * PH * PW))
    return jnp.stack(quads, axis=0), PH, PW       # (4, K, B*PH*PW)


# ------------------------------ parameter set-up --------------------------------

# Channel groups used by c3_0 .. c3_15 in the reference module.
_C3_GROUPS = [
    [0, 1, 2], [1, 2, 3], [2, 3, 4], [3, 4, 5], [0, 4, 5], [0, 1, 5],
    [0, 1, 2, 3], [1, 2, 3, 4], [2, 3, 4, 5], [0, 3, 4, 5], [0, 1, 4, 5],
    [0, 1, 2, 5], [0, 1, 3, 4], [1, 2, 4, 5], [0, 2, 3, 5],
    [0, 1, 2, 3, 4, 5],
]


def init_params(key, n_filters=4, in_channels=1, kernel_size=5):
    ks = jax.random.split(key, 12)
    s = 0.1

    def rnd(k, shape):
        return s * jax.random.normal(k, shape, dtype=jnp.float32)

    params = {}
    # Fixed "filters" bank of the first conv (bias-free), pre-flattened once.
    filters = rnd(ks[0], (n_filters, in_channels, kernel_size, kernel_size))
    params["filters_wm"] = filters.reshape(
        n_filters, in_channels * kernel_size * kernel_size)

    params["c1_wm"] = rnd(ks[1], (6, n_filters, 5, 5)).reshape(6, n_filters * 25)
    params["c1_b"] = rnd(ks[2], (6,))

    # Pack the 16 grouped c3 convs into one (16, 6*5*5) weight matrix (zeros
    # at non-selected input channels == identical math to the per-group convs).
    c3_w = jnp.zeros((16, 6, 5, 5), dtype=jnp.float32)
    c3_keys = jax.random.split(ks[3], 16)
    c3_b_keys = jax.random.split(ks[4], 16)
    c3_b = []
    for i, grp in enumerate(_C3_GROUPS):
        wi = rnd(c3_keys[i], (1, len(grp), 5, 5))
        for j, ch in enumerate(grp):
            c3_w = c3_w.at[i, ch].set(wi[0, j])
        c3_b.append(rnd(c3_b_keys[i], (1,))[0])
    params["c3_wm"] = c3_w.reshape(16, 6 * 25)
    params["c3_b"] = jnp.stack(c3_b)

    params["c5_wm"] = rnd(ks[5], (120, 16, 5, 5)).reshape(120, 400)
    params["c5_b"] = rnd(ks[6], (120,))
    params["l1_w"] = rnd(ks[7], (84, 120))
    params["l1_b"] = rnd(ks[8], (84,))
    params["l2_w"] = rnd(ks[9], (10, 84))
    params["l2_b"] = rnd(ks[10], (10,))
    return params


# ---------------------------------- forward -------------------------------------

def lenet5_filocl_forward(x, params, *, kernel_size=5):
    """x: (B, Cin, 32, 32) NCHW -> logits (B, 10) f32."""
    B = x.shape[0]
    n_filters = params["filters_wm"].shape[0]

    # NCHW -> channel-first (C, B, H, W); cast to bf16 *before* im2col so the
    # 25x-expanded patch tensors are materialized/streamed from HBM as bf16.
    a = jnp.transpose(x, (1, 0, 2, 3)).astype(_ACT_DTYPE)

    # tanh(conv2d(x, filters, padding=k//2)) -- bias-free first conv.
    p, oh, ow = im2col_cf(a, kernel_size, pad=kernel_size // 2)
    a = conv_tanh(params["filters_wm"], p)                    # (nf, B*32*32)
    a = a.reshape(n_filters, B, oh, ow)

    # c1 + tanh + s2 (2x2 avg-pool) fused into one kernel; s2's 0.25 scale is
    # folded into c3's weights below.
    qp, ph, pw = im2col_pool_cf(a, 5)
    a = conv_pool_tanh(params["c1_wm"], params["c1_b"], qp)   # (6, B*14*14)
    a = a.reshape(6, B, ph, pw)

    # c3 (16 grouped convs packed into one weight matrix) + tanh + s4 fused;
    # s4's 0.25 scale is folded into c5's weights inside fused_tail.
    qp, ph, pw = im2col_pool_cf(a, 5)
    a = conv_pool_tanh(0.25 * params["c3_wm"], params["c3_b"], qp)  # (16, B*25)
    a = a.reshape(16, B, ph, pw)                              # (16, B, 5, 5)

    # Fused c5 -> tanh -> l1 -> tanh -> l2 (single kernel, tiny intermediates
    # stay in VMEM).  (16,B,5,5) -> (16*5*5, B) patches in (c,kh,kw) order.
    p = a.transpose(0, 2, 3, 1).reshape(16 * 25, B)           # (400, B)
    y = fused_tail(p, params)                                 # (10, B)
    return y.T                                                # (B, 10)


# ----------------------------------- main ----------------------------------------

if __name__ == "__main__":
    key = jax.random.PRNGKey(0)
    kp, kx = jax.random.split(key)

    B, CIN, KSIZE, NFILT = 2, 1, 5, 4
    params = init_params(kp, n_filters=NFILT, in_channels=CIN, kernel_size=KSIZE)
    x = jax.random.normal(kx, (B, CIN, 32, 32), dtype=jnp.float32)

    fwd = jax.jit(functools.partial(lenet5_filocl_forward, kernel_size=KSIZE))
    out = jax.block_until_ready(fwd(x, params))

    assert out.shape == (B, 10), out.shape
    assert out.dtype == jnp.float32
    assert bool(jnp.all(jnp.isfinite(out)))
    print("KERNEL_OK")
</pallas_src>

<mosaic_0001>
module attributes {stable_mosaic.version = 11 : i64} {
  func.func @_conv_kernel(%arg0: i32, %arg1: memref<4x25xbf16, #tpu.memory_space<vmem>>, %arg2: memref<25x1024xbf16, #tpu.memory_space<vmem>>, %arg3: memref<4x1024xbf16, #tpu.memory_space<vmem>>) attributes {dimension_semantics = [#tpu.dimension_semantics<parallel>], iteration_bounds = array<i64: 2>, scalar_prefetch = 0 : i64, scratch_operands = 0 : i64, tpu.core_type = #tpu.core_type<tc>, window_params = [{pipeline_mode = #tpu.pipeline_mode<synchronous>, transform_indices = @transform_0, window_bounds = array<i64: 4, 25>}, {transform_indices = @transform_1, window_bounds = array<i64: 25, 1024>}, {transform_indices = @transform_2, window_bounds = array<i64: 4, 1024>}]} {
    %c0 = arith.constant 0 : index
    %c0_0 = arith.constant 0 : index
    %0 = vector.load %arg1[%c0, %c0_0] : memref<4x25xbf16, #tpu.memory_space<vmem>>, vector<4x25xbf16>
    %c0_1 = arith.constant 0 : index
    %c0_2 = arith.constant 0 : index
    %1 = vector.load %arg2[%c0_1, %c0_2] : memref<25x1024xbf16, #tpu.memory_space<vmem>>, vector<25x1024xbf16>
    %cst = arith.constant dense<0.000000e+00> : vector<4x1024xf32>
    %2 = tpu.matmul %0, %1, %cst {dimension_numbers = #tpu.dot_dimension_numbers<[1], [0], [0], [1], [0, 0, 1, 1], [], []>} : vector<4x25xbf16>, vector<25x1024xbf16>, vector<4x1024xf32> -> vector<4x1024xf32>
    %3 = math.tanh %2 : vector<4x1024xf32>
    %4 = arith.truncf %3 : vector<4x1024xf32> to vector<4x1024xbf16>
    %c0_3 = arith.constant 0 : index
    %c0_4 = arith.constant 0 : index
    %5 = vector.load %arg3[%c0_3, %c0_4] : memref<4x1024xbf16, #tpu.memory_space<vmem>>, vector<4x1024xbf16>
    tpu.vector_store %arg3[%c0_3, %c0_4], %4 {strides = array<i32>} : memref<4x1024xbf16, #tpu.memory_space<vmem>>, vector<4x1024xbf16>,
    return
  }
  func.func @transform_0(%arg0: i32) -> (i32, i32) {
    %c0_i32 = arith.constant 0 : i32
    %c0_i32_0 = arith.constant 0 : i32
    %c0_i32_1 = arith.constant 0 : i32
    return %c0_i32, %c0_i32_0 : i32, i32
  }
  func.func @transform_1(%arg0: i32) -> (i32, i32) {
    %c0_i32 = arith.constant 0 : i32
    %c0_i32_0 = arith.constant 0 : i32
    return %c0_i32, %arg0 : i32, i32
  }
  func.func @transform_2(%arg0: i32) -> (i32, i32) {
    %c0_i32 = arith.constant 0 : i32
    %c0_i32_0 = arith.constant 0 : i32
    return %c0_i32, %arg0 : i32, i32
  }
}

module attributes {stable_mosaic.version = 11 : i64} {
  func.func @_conv_pool_kernel(%arg0: i32, %arg1: memref<6x100xbf16, #tpu.memory_space<vmem>>, %arg2: memref<6x1xf32, #tpu.memory_space<vmem>>, %arg3: memref<4x100x392xbf16, #tpu.memory_space<vmem>>, %arg4: memref<6x392xbf16, #tpu.memory_space<vmem>>) attributes {dimension_semantics = [#tpu.dimension_semantics<parallel>], iteration_bounds = array<i64: 1>, scalar_prefetch = 0 : i64, scratch_operands = 0 : i64, tpu.core_type = #tpu.core_type<tc>, window_params = [{pipeline_mode = #tpu.pipeline_mode<synchronous>, transform_indices = @transform_0, window_bounds = array<i64: 6, 100>}, {pipeline_mode = #tpu.pipeline_mode<synchronous>, transform_indices = @transform_1, window_bounds = array<i64: 6, 1>}, {transform_indices = @transform_2, window_bounds = array<i64: 4, 100, 392>}, {transform_indices = @transform_3, window_bounds = array<i64: 6, 392>}]} {
    %c0 = arith.constant 0 : index
    %c0_0 = arith.constant 0 : index
    %0 = vector.load %arg1[%c0, %c0_0] : memref<6x100xbf16, #tpu.memory_space<vmem>>, vector<6x100xbf16>
    %c0_1 = arith.constant 0 : index
    %c0_2 = arith.constant 0 : index
    %1 = vector.load %arg2[%c0_1, %c0_2] : memref<6x1xf32, #tpu.memory_space<vmem>>, vector<6x1xf32>
    %c0_3 = arith.constant 0 : index
    %c0_4 = arith.constant 0 : index
    %c0_5 = arith.constant 0 : index
    %2 = vector.load %arg3[%c0_3, %c0_4, %c0_5] : memref<4x100x392xbf16, #tpu.memory_space<vmem>>, vector<1x100x392xbf16>
    %3 = vector.shape_cast %2 : vector<1x100x392xbf16> to vector<100x392xbf16>
    %cst = arith.constant dense<0.000000e+00> : vector<6x392xf32>
    %4 = tpu.matmul %0, %3, %cst {dimension_numbers = #tpu.dot_dimension_numbers<[1], [0], [0], [1], [0, 0, 1, 1], [], []>} : vector<6x100xbf16>, vector<100x392xbf16>, vector<6x392xf32> -> vector<6x392xf32>
    %5 = vector.broadcast %1 : vector<6x1xf32> to vector<6x392xf32>
    %6 = arith.addf %4, %5 : vector<6x392xf32>
    %7 = math.tanh %6 : vector<6x392xf32>
    %c1 = arith.constant 1 : index
    %c0_6 = arith.constant 0 : index
    %c0_7 = arith.constant 0 : index
    %8 = vector.load %arg3[%c1, %c0_6, %c0_7] : memref<4x100x392xbf16, #tpu.memory_space<vmem>>, vector<1x100x392xbf16>
    %9 = vector.shape_cast %8 : vector<1x100x392xbf16> to vector<100x392xbf16>
    %cst_8 = arith.constant dense<0.000000e+00> : vector<6x392xf32>
    %10 = tpu.matmul %0, %9, %cst_8 {dimension_numbers = #tpu.dot_dimension_numbers<[1], [0], [0], [1], [0, 0, 1, 1], [], []>} : vector<6x100xbf16>, vector<100x392xbf16>, vector<6x392xf32> -> vector<6x392xf32>
    %11 = vector.broadcast %1 : vector<6x1xf32> to vector<6x392xf32>
    %12 = arith.addf %10, %11 : vector<6x392xf32>
    %13 = math.tanh %12 : vector<6x392xf32>
    %14 = arith.addf %7, %13 : vector<6x392xf32>
    %c2 = arith.constant 2 : index
    %c0_9 = arith.constant 0 : index
    %c0_10 = arith.constant 0 : index
    %15 = vector.load %arg3[%c2, %c0_9, %c0_10] : memref<4x100x392xbf16, #tpu.memory_space<vmem>>, vector<1x100x392xbf16>
    %16 = vector.shape_cast %15 : vector<1x100x392xbf16> to vector<100x392xbf16>
    %cst_11 = arith.constant dense<0.000000e+00> : vector<6x392xf32>
    %17 = tpu.matmul %0, %16, %cst_11 {dimension_numbers = #tpu.dot_dimension_numbers<[1], [0], [0], [1], [0, 0, 1, 1], [], []>} : vector<6x100xbf16>, vector<100x392xbf16>, vector<6x392xf32> -> vector<6x392xf32>
    %18 = vector.broadcast %1 : vector<6x1xf32> to vector<6x392xf32>
    %19 = arith.addf %17, %18 : vector<6x392xf32>
    %20 = math.tanh %19 : vector<6x392xf32>
    %21 = arith.addf %14, %20 : vector<6x392xf32>
    %c3 = arith.constant 3 : index
    %c0_12 = arith.constant 0 : index
    %c0_13 = arith.constant 0 : index
    %22 = vector.load %arg3[%c3, %c0_12, %c0_13] : memref<4x100x392xbf16, #tpu.memory_space<vmem>>, vector<1x100x392xbf16>
    %23 = vector.shape_cast %22 : vector<1x100x392xbf16> to vector<100x392xbf16>
    %cst_14 = arith.constant dense<0.000000e+00> : vector<6x392xf32>
    %24 = tpu.matmul %0, %23, %cst_14 {dimension_numbers = #tpu.dot_dimension_numbers<[1], [0], [0], [1], [0, 0, 1, 1], [], []>} : vector<6x100xbf16>, vector<100x392xbf16>, vector<6x392xf32> -> vector<6x392xf32>
    %25 = vector.broadcast %1 : vector<6x1xf32> to vector<6x392xf32>
    %26 = arith.addf %24, %25 : vector<6x392xf32>
    %27 = math.tanh %26 : vector<6x392xf32>
    %28 = arith.addf %21, %27 : vector<6x392xf32>
    %29 = arith.truncf %28 : vector<6x392xf32> to vector<6x392xbf16>
    %c0_15 = arith.constant 0 : index
    %c0_16 = arith.constant 0 : index
    %30 = vector.load %arg4[%c0_15, %c0_16] : memref<6x392xbf16, #tpu.memory_space<vmem>>, vector<6x392xbf16>
    tpu.vector_store %arg4[%c0_15, %c0_16], %29 {strides = array<i32>} : memref<6x392xbf16, #tpu.memory_space<vmem>>, vector<6x392xbf16>,
    return
  }
  func.func @transform_0(%arg0: i32) -> (i32, i32) {
    %c0_i32 = arith.constant 0 : i32
    %c0_i32_0 = arith.constant 0 : i32
    %c0_i32_1 = arith.constant 0 : i32
    return %c0_i32, %c0_i32_0 : i32, i32
  }
  func.func @transform_1(%arg0: i32) -> (i32, i32) {
    %c0_i32 = arith.constant 0 : i32
    %c0_i32_0 = arith.constant 0 : i32
    %c0_i32_1 = arith.constant 0 : i32
    return %c0_i32, %c0_i32_0 : i32, i32
  }
  func.func @transform_2(%arg0: i32) -> (i32, i32, i32) {
    %c0_i32 = arith.constant 0 : i32
    %c0_i32_0 = arith.constant 0 : i32
    %c0_i32_1 = arith.constant 0 : i32
    return %c0_i32, %c0_i32_0, %arg0 : i32, i32, i32
  }
  func.func @transform_3(%arg0: i32) -> (i32, i32) {
    %c0_i32 = arith.constant 0 : i32
    %c0_i32_0 = arith.constant 0 : i32
    return %c0_i32, %arg0 : i32, i32
  }
}

module attributes {stable_mosaic.version = 11 : i64} {
  func.func @_conv_pool_kernel(%arg0: i32, %arg1: memref<16x150xbf16, #tpu.memory_space<vmem>>, %arg2: memref<16x1xf32, #tpu.memory_space<vmem>>, %arg3: memref<4x150x50xbf16, #tpu.memory_space<vmem>>, %arg4: memref<16x50xbf16, #tpu.memory_space<vmem>>) attributes {dimension_semantics = [#tpu.dimension_semantics<parallel>], iteration_bounds = array<i64: 1>, scalar_prefetch = 0 : i64, scratch_operands = 0 : i64, tpu.core_type = #tpu.core_type<tc>, window_params = [{pipeline_mode = #tpu.pipeline_mode<synchronous>, transform_indices = @transform_0, window_bounds = array<i64: 16, 150>}, {pipeline_mode = #tpu.pipeline_mode<synchronous>, transform_indices = @transform_1, window_bounds = array<i64: 16, 1>}, {transform_indices = @transform_2, window_bounds = array<i64: 4, 150, 50>}, {transform_indices = @transform_3, window_bounds = array<i64: 16, 50>}]} {
    %c0 = arith.constant 0 : index
    %c0_0 = arith.constant 0 : index
    %0 = vector.load %arg1[%c0, %c0_0] : memref<16x150xbf16, #tpu.memory_space<vmem>>, vector<16x150xbf16>
    %c0_1 = arith.constant 0 : index
    %c0_2 = arith.constant 0 : index
    %1 = vector.load %arg2[%c0_1, %c0_2] : memref<16x1xf32, #tpu.memory_space<vmem>>, vector<16x1xf32>
    %c0_3 = arith.constant 0 : index
    %c0_4 = arith.constant 0 : index
    %c0_5 = arith.constant 0 : index
    %2 = vector.load %arg3[%c0_3, %c0_4, %c0_5] : memref<4x150x50xbf16, #tpu.memory_space<vmem>>, vector<1x150x50xbf16>
    %3 = vector.shape_cast %2 : vector<1x150x50xbf16> to vector<150x50xbf16>
    %cst = arith.constant dense<0.000000e+00> : vector<16x50xf32>
    %4 = tpu.matmul %0, %3, %cst {dimension_numbers = #tpu.dot_dimension_numbers<[1], [0], [0], [1], [0, 0, 1, 1], [], []>} : vector<16x150xbf16>, vector<150x50xbf16>, vector<16x50xf32> -> vector<16x50xf32>
    %5 = vector.broadcast %1 : vector<16x1xf32> to vector<16x50xf32>
    %6 = arith.addf %4, %5 : vector<16x50xf32>
    %7 = math.tanh %6 : vector<16x50xf32>
    %c1 = arith.constant 1 : index
    %c0_6 = arith.constant 0 : index
    %c0_7 = arith.constant 0 : index
    %8 = vector.load %arg3[%c1, %c0_6, %c0_7] : memref<4x150x50xbf16, #tpu.memory_space<vmem>>, vector<1x150x50xbf16>
    %9 = vector.shape_cast %8 : vector<1x150x50xbf16> to vector<150x50xbf16>
    %cst_8 = arith.constant dense<0.000000e+00> : vector<16x50xf32>
    %10 = tpu.matmul %0, %9, %cst_8 {dimension_numbers = #tpu.dot_dimension_numbers<[1], [0], [0], [1], [0, 0, 1, 1], [], []>} : vector<16x150xbf16>, vector<150x50xbf16>, vector<16x50xf32> -> vector<16x50xf32>
    %11 = vector.broadcast %1 : vector<16x1xf32> to vector<16x50xf32>
    %12 = arith.addf %10, %11 : vector<16x50xf32>
    %13 = math.tanh %12 : vector<16x50xf32>
    %14 = arith.addf %7, %13 : vector<16x50xf32>
    %c2 = arith.constant 2 : index
    %c0_9 = arith.constant 0 : index
    %c0_10 = arith.constant 0 : index
    %15 = vector.load %arg3[%c2, %c0_9, %c0_10] : memref<4x150x50xbf16, #tpu.memory_space<vmem>>, vector<1x150x50xbf16>
    %16 = vector.shape_cast %15 : vector<1x150x50xbf16> to vector<150x50xbf16>
    %cst_11 = arith.constant dense<0.000000e+00> : vector<16x50xf32>
    %17 = tpu.matmul %0, %16, %cst_11 {dimension_numbers = #tpu.dot_dimension_numbers<[1], [0], [0], [1], [0, 0, 1, 1], [], []>} : vector<16x150xbf16>, vector<150x50xbf16>, vector<16x50xf32> -> vector<16x50xf32>
    %18 = vector.broadcast %1 : vector<16x1xf32> to vector<16x50xf32>
    %19 = arith.addf %17, %18 : vector<16x50xf32>
    %20 = math.tanh %19 : vector<16x50xf32>
    %21 = arith.addf %14, %20 : vector<16x50xf32>
    %c3 = arith.constant 3 : index
    %c0_12 = arith.constant 0 : index
    %c0_13 = arith.constant 0 : index
    %22 = vector.load %arg3[%c3, %c0_12, %c0_13] : memref<4x150x50xbf16, #tpu.memory_space<vmem>>, vector<1x150x50xbf16>
    %23 = vector.shape_cast %22 : vector<1x150x50xbf16> to vector<150x50xbf16>
    %cst_14 = arith.constant dense<0.000000e+00> : vector<16x50xf32>
    %24 = tpu.matmul %0, %23, %cst_14 {dimension_numbers = #tpu.dot_dimension_numbers<[1], [0], [0], [1], [0, 0, 1, 1], [], []>} : vector<16x150xbf16>, vector<150x50xbf16>, vector<16x50xf32> -> vector<16x50xf32>
    %25 = vector.broadcast %1 : vector<16x1xf32> to vector<16x50xf32>
    %26 = arith.addf %24, %25 : vector<16x50xf32>
    %27 = math.tanh %26 : vector<16x50xf32>
    %28 = arith.addf %21, %27 : vector<16x50xf32>
    %29 = arith.truncf %28 : vector<16x50xf32> to vector<16x50xbf16>
    %c0_15 = arith.constant 0 : index
    %c0_16 = arith.constant 0 : index
    %30 = vector.load %arg4[%c0_15, %c0_16] : memref<16x50xbf16, #tpu.memory_space<vmem>>, vector<16x50xbf16>
    tpu.vector_store %arg4[%c0_15, %c0_16], %29 {strides = array<i32>} : memref<16x50xbf16, #tpu.memory_space<vmem>>, vector<16x50xbf16>,
    return
  }
  func.func @transform_0(%arg0: i32) -> (i32, i32) {
    %c0_i32 = arith.constant 0 : i32
    %c0_i32_0 = arith.constant 0 : i32
    %c0_i32_1 = arith.constant 0 : i32
    return %c0_i32, %c0_i32_0 : i32, i32
  }
  func.func @transform_1(%arg0: i32) -> (i32, i32) {
    %c0_i32 = arith.constant 0 : i32
    %c0_i32_0 = arith.constant 0 : i32
    %c0_i32_1 = arith.constant 0 : i32
    return %c0_i32, %c0_i32_0 : i32, i32
  }
  func.func @transform_2(%arg0: i32) -> (i32, i32, i32) {
    %c0_i32 = arith.constant 0 : i32
    %c0_i32_0 = arith.constant 0 : i32
    %c0_i32_1 = arith.constant 0 : i32
    return %c0_i32, %c0_i32_0, %arg0 : i32, i32, i32
  }
  func.func @transform_3(%arg0: i32) -> (i32, i32) {
    %c0_i32 = arith.constant 0 : i32
    %c0_i32_0 = arith.constant 0 : i32
    return %c0_i32, %arg0 : i32, i32
  }
}

module attributes {stable_mosaic.version = 11 : i64} {
  func.func @_tail_kernel(%arg0: i32, %arg1: memref<400x2xbf16, #tpu.memory_space<vmem>>, %arg2: memref<120x400xbf16, #tpu.memory_space<vmem>>, %arg3: memref<120x1xf32, #tpu.memory_space<vmem>>, %arg4: memref<84x120xbf16, #tpu.memory_space<vmem>>, %arg5: memref<84x1xf32, #tpu.memory_space<vmem>>, %arg6: memref<10x84xbf16, #tpu.memory_space<vmem>>, %arg7: memref<10x1xf32, #tpu.memory_space<vmem>>, %arg8: memref<10x2xf32, #tpu.memory_space<vmem>>) attributes {dimension_semantics = [#tpu.dimension_semantics<parallel>], iteration_bounds = array<i64: 1>, scalar_prefetch = 0 : i64, scratch_operands = 0 : i64, tpu.core_type = #tpu.core_type<tc>, window_params = [{transform_indices = @transform_0, window_bounds = array<i64: 400, 2>}, {pipeline_mode = #tpu.pipeline_mode<synchronous>, transform_indices = @transform_1, window_bounds = array<i64: 120, 400>}, {pipeline_mode = #tpu.pipeline_mode<synchronous>, transform_indices = @transform_2, window_bounds = array<i64: 120, 1>}, {pipeline_mode = #tpu.pipeline_mode<synchronous>, transform_indices = @transform_3, window_bounds = array<i64: 84, 120>}, {pipeline_mode = #tpu.pipeline_mode<synchronous>, transform_indices = @transform_4, window_bounds = array<i64: 84, 1>}, {pipeline_mode = #tpu.pipeline_mode<synchronous>, transform_indices = @transform_5, window_bounds = array<i64: 10, 84>}, {pipeline_mode = #tpu.pipeline_mode<synchronous>, transform_indices = @transform_6, window_bounds = array<i64: 10, 1>}, {transform_indices = @transform_7, window_bounds = array<i64: 10, 2>}]} {
    %c0 = arith.constant 0 : index
    %c0_0 = arith.constant 0 : index
    %0 = vector.load %arg2[%c0, %c0_0] : memref<120x400xbf16, #tpu.memory_space<vmem>>, vector<120x400xbf16>
    %c0_1 = arith.constant 0 : index
    %c0_2 = arith.constant 0 : index
    %1 = vector.load %arg1[%c0_1, %c0_2] : memref<400x2xbf16, #tpu.memory_space<vmem>>, vector<400x2xbf16>
    %cst = arith.constant dense<0.000000e+00> : vector<120x2xf32>
    %2 = tpu.matmul %0, %1, %cst {dimension_numbers = #tpu.dot_dimension_numbers<[1], [0], [0], [1], [0, 0, 1, 1], [], []>} : vector<120x400xbf16>, vector<400x2xbf16>, vector<120x2xf32> -> vector<120x2xf32>
    %c0_3 = arith.constant 0 : index
    %c0_4 = arith.constant 0 : index
    %3 = vector.load %arg3[%c0_3, %c0_4] : memref<120x1xf32, #tpu.memory_space<vmem>>, vector<120x1xf32>
    %4 = vector.broadcast %3 : vector<120x1xf32> to vector<120x2xf32>
    %5 = arith.addf %2, %4 : vector<120x2xf32>
    %6 = math.tanh %5 : vector<120x2xf32>
    %c0_5 = arith.constant 0 : index
    %c0_6 = arith.constant 0 : index
    %7 = vector.load %arg4[%c0_5, %c0_6] : memref<84x120xbf16, #tpu.memory_space<vmem>>, vector<84x120xbf16>
    %8 = arith.truncf %6 : vector<120x2xf32> to vector<120x2xbf16>
    %cst_7 = arith.constant dense<0.000000e+00> : vector<84x2xf32>
    %9 = tpu.matmul %7, %8, %cst_7 {dimension_numbers = #tpu.dot_dimension_numbers<[1], [0], [0], [1], [0, 0, 1, 1], [], []>} : vector<84x120xbf16>, vector<120x2xbf16>, vector<84x2xf32> -> vector<84x2xf32>
    %c0_8 = arith.constant 0 : index
    %c0_9 = arith.constant 0 : index
    %10 = vector.load %arg5[%c0_8, %c0_9] : memref<84x1xf32, #tpu.memory_space<vmem>>, vector<84x1xf32>
    %11 = vector.broadcast %10 : vector<84x1xf32> to vector<84x2xf32>
    %12 = arith.addf %9, %11 : vector<84x2xf32>
    %13 = math.tanh %12 : vector<84x2xf32>
    %c0_10 = arith.constant 0 : index
    %c0_11 = arith.constant 0 : index
    %14 = vector.load %arg6[%c0_10, %c0_11] : memref<10x84xbf16, #tpu.memory_space<vmem>>, vector<10x84xbf16>
    %15 = arith.truncf %13 : vector<84x2xf32> to vector<84x2xbf16>
    %cst_12 = arith.constant dense<0.000000e+00> : vector<10x2xf32>
    %16 = tpu.matmul %14, %15, %cst_12 {dimension_numbers = #tpu.dot_dimension_numbers<[1], [0], [0], [1], [0, 0, 1, 1], [], []>} : vector<10x84xbf16>, vector<84x2xbf16>, vector<10x2xf32> -> vector<10x2xf32>
    %c0_13 = arith.constant 0 : index
    %c0_14 = arith.constant 0 : index
    %17 = vector.load %arg7[%c0_13, %c0_14] : memref<10x1xf32, #tpu.memory_space<vmem>>, vector<10x1xf32>
    %18 = vector.broadcast %17 : vector<10x1xf32> to vector<10x2xf32>
    %19 = arith.addf %16, %18 : vector<10x2xf32>
    %c0_15 = arith.constant 0 : index
    %c0_16 = arith.constant 0 : index
    %20 = vector.load %arg8[%c0_15, %c0_16] : memref<10x2xf32, #tpu.memory_space<vmem>>, vector<10x2xf32>
    tpu.vector_store %arg8[%c0_15, %c0_16], %19 {strides = array<i32>} : memref<10x2xf32, #tpu.memory_space<vmem>>, vector<10x2xf32>,
    return
  }
  func.func @transform_0(%arg0: i32) -> (i32, i32) {
    %c0_i32 = arith.constant 0 : i32
    %c0_i32_0 = arith.constant 0 : i32
    return %c0_i32, %arg0 : i32, i32
  }
  func.func @transform_1(%arg0: i32) -> (i32, i32) {
    %c0_i32 = arith.constant 0 : i32
    %c0_i32_0 = arith.constant 0 : i32
    %c0_i32_1 = arith.constant 0 : i32
    return %c0_i32, %c0_i32_0 : i32, i32
  }
  func.func @transform_2(%arg0: i32) -> (i32, i32) {
    %c0_i32 = arith.constant 0 : i32
    %c0_i32_0 = arith.constant 0 : i32
    %c0_i32_1 = arith.constant 0 : i32
    return %c0_i32, %c0_i32_0 : i32, i32
  }
  func.func @transform_3(%arg0: i32) -> (i32, i32) {
    %c0_i32 = arith.constant 0 : i32
    %c0_i32_0 = arith.constant 0 : i32
    %c0_i32_1 = arith.constant 0 : i32
    return %c0_i32, %c0_i32_0 : i32, i32
  }
  func.func @transform_4(%arg0: i32) -> (i32, i32) {
    %c0_i32 = arith.constant 0 : i32
    %c0_i32_0 = arith.constant 0 : i32
    %c0_i32_1 = arith.constant 0 : i32
    return %c0_i32, %c0_i32_0 : i32, i32
  }
  func.func @transform_5(%arg0: i32) -> (i32, i32) {
    %c0_i32 = arith.constant 0 : i32
    %c0_i32_0 = arith.constant 0 : i32
    %c0_i32_1 = arith.constant 0 : i32
    return %c0_i32, %c0_i32_0 : i32, i32
  }
  func.func @transform_6(%arg0: i32) -> (i32, i32) {
    %c0_i32 = arith.constant 0 : i32
    %c0_i32_0 = arith.constant 0 : i32
    %c0_i32_1 = arith.constant 0 : i32
    return %c0_i32, %c0_i32_0 : i32, i32
  }
  func.func @transform_7(%arg0: i32) -> (i32, i32) {
    %c0_i32 = arith.constant 0 : i32
    %c0_i32_0 = arith.constant 0 : i32
    return %c0_i32, %arg0 : i32, i32
  }
}

</mosaic_0001>

<bundles_post_ra>
// kernel: lenet5_filocl_forward.4
= control target key start
LH: loop header
LB: loop body
LE: loop exit
PB: predicated region body
PF: predicated region fallthrough
CT: control target
= control target key end

     0   :  { %s729_s9 = smov 0   ;;  %s731_s10 = smov 0   ;;  %s828_s0 = inlined_call_operand.vmem [shape: bf16[4,25], index: 0, kind: input, shape index: {}]   ;;  %s829_s1 = inlined_call_operand.vmem [shape: bf16[25,2048], index: 1, kind: input, shape index: {}]   ;;  %s830_s2 = inlined_call_operand.vmem [shape: bf16[4,2048], index: 2, kind: output, shape index: {}]  }
   0x1   :  { %s733_s11 = smov 0  }
   0x2 LB: > { %s606_s12 = sadd.s32 4294967295, %s709_s11   ;;  %s746_s13 = sadd.s32 1, %s709_s11   ;;  %s709_s11 = sphi %s733_s11, %s833_s11   ;;  %s705_s10 = sphi %s731_s10, %s832_s10   ;;  %s701_s9 = sphi %s729_s9, %s831_s9  }
   0x3   : > { %s37_s14 = ssub.s32 %s709_s11, %s746_s13  ;;  %s40_s15 = sadd.s32 1, %s705_s10 }
   0x4   : > { %p38_p0 = scmp.eq.s32.totalorder %s37_s14, 0  ;;  %p47_p1 = scmp.ne.s32.totalorder %s705_s10, %s701_s9 }
   0x5   : > { %p48_p2 = scmp.eq.s32.totalorder %s709_s11, 0  ;;  %p609_p4 = scmp.ge.s32.totalorder %s709_s11, 2 }
   0x6   : > { %s755_s16 = scalar_select %p38_p0, %s705_s10, %s40_s15  }
   0x7   : > { %p49_p3 = por %p48_p2, %p47_p1  ;;  %102 = sbr.rel (%p609_p4) target bundleno = 26 (0x1a), region = 20 }
   0xe   : > { %105 = sbr.rel (!%p49_p3) target bundleno = 26 (0x1a), region = 24  ;;  %s107_s17 = sand.u32 (%p49_p3), 1, %s705_s10  }
   0xf   : > { %s643_s18 = sshll.u32 (%p49_p3), %s709_s11, 5  ;;  %s610_s19 = sshll.u32 (%p49_p3), %s107_s17, 7 }
  0x10   : > { %s763_s22 = scalar_lea.vmem (%p49_p3), %s829_s1, %s643_s18  ;;  %s109_s23 = scalar_lea.vmem (%p49_p3), [#allocation2], %s610_s19 }
  0x11   : > { %v125_v0 = vld [vmem:[%s763_s22] sm:$0xff] (%p49_p3)  ;;  %v127_v1 = vld [vmem:[%s763_s22 + $0x8] sm:$0xff] (%p49_p3)  ;;  %v129_v2 = vld [vmem:[%s763_s22 + $0x10] sm:$0xff] (%p49_p3) }
  0x12   : > { %126 = vst [vmem:[%s109_s23] sm:$0xff] (%p49_p3), %v125_v0  ;;  %128 = vst [vmem:[%s109_s23 + $0x8] sm:$0xff] (%p49_p3), %v127_v1  ;;  %v131_v3 = vld [vmem:[%s763_s22 + $0x18] sm:$0xff] (%p49_p3)  ;;  %v133_v4 = vld [vmem:[%s763_s22 + $0x40] sm:$0xff] (%p49_p3) }
  0x13   : > { %130 = vst [vmem:[%s109_s23 + $0x10] sm:$0xff] (%p49_p3), %v129_v2  ;;  %v135_v5 = vld [vmem:[%s763_s22 + $0x48] sm:$0xff] (%p49_p3)  ;;  %132 = vst [vmem:[%s109_s23 + $0x18] sm:$0xff] (%p49_p3), %v131_v3  ;;  %v137_v6 = vld [vmem:[%s763_s22 + $0x50] sm:$0xff] (%p49_p3) }
  0x14   : > { %134 = vst [vmem:[%s109_s23 + $0x20] sm:$0xff] (%p49_p3), %v133_v4  ;;  %136 = vst [vmem:[%s109_s23 + $0x28] sm:$0xff] (%p49_p3), %v135_v5  ;;  %v139_v7 = vld [vmem:[%s763_s22 + $0x58] sm:$0xff] (%p49_p3)  ;;  %v141_v8 = vld [vmem:[%s763_s22 + $0x80] sm:$0xff] (%p49_p3) }
  0x15   : > { %138 = vst [vmem:[%s109_s23 + $0x30] sm:$0xff] %v137_v6  ;;  %140 = vst [vmem:[%s109_s23 + $0x38] sm:$0xff] %v139_v7  ;;  %v143_v9 = vld [vmem:[%s763_s22 + $0x88] sm:$0xff]  ;;  %v145_v10 = vld [vmem:[%s763_s22 + $0x90] sm:$0xff] }
  0x16   : > { %142 = vst [vmem:[%s109_s23 + $0x40] sm:$0xff] %v141_v8  ;;  %v147_v11 = vld [vmem:[%s763_s22 + $0x98] sm:$0xff]  ;;  %144 = vst [vmem:[%s109_s23 + $0x48] sm:$0xff] %v143_v9  ;;  %v149_v12 = vld [vmem:[%s763_s22 + $0xc0] sm:$0xff] }
  0x17   : > { %146 = vst [vmem:[%s109_s23 + $0x50] sm:$0xff] %v145_v10  ;;  %148 = vst [vmem:[%s109_s23 + $0x58] sm:$0xff] %v147_v11  ;;  %v151_v13 = vld [vmem:[%s763_s22 + $0xc8] sm:$0xff]  ;;  %v153_v14 = vld [vmem:[%s763_s22 + $0xd0] sm:$0xff] }
  0x18   : > { %150 = vst [vmem:[%s109_s23 + $0x60] sm:$0xff] %v149_v12  ;;  %152 = vst [vmem:[%s109_s23 + $0x68] sm:$0xff] %v151_v13  ;;  %v155_v15 = vld [vmem:[%s763_s22 + $0xd8] sm:$0xff] }
  0x19   : > { %154 = vst [vmem:[%s109_s23 + $0x70] sm:$0xff] %v153_v14  ;;  %156 = vst [vmem:[%s109_s23 + $0x78] sm:$0xff] %v155_v15 }
  0x1a PF: > { %p613_p5 = scmp.ge.s32.totalorder %s709_s11, 1  ;;  %p161_p6 = scmp.lt.s32.totalorder %s709_s11, 3 }
  0x1c   : > { %p162_p7 = pnand %p613_p5, %p161_p6 }
  0x1d   : > { %s168_s24 = sand.u32 (!%p162_p7), 1, %s701_s9   ;;  %vm290_vm0 = vcmask (!%p162_p7), 1043456   ;;  %vm291_vm1 = vcmask (!%p162_p7), 1044480   ;;  %v711_v16 = vmov (!%p162_p7), 65535   ;;  %v712_v18 = vmov (!%p162_p7), 0   ;;  %s615_s29 = sshll.u32 (!%p162_p7), %s606_s12, 3 }
  0x1e   : > { %165 = sbr.rel (%p162_p7) target bundleno = 285 (0x11d), region = 47  ;;  %s614_s25 = sshll.u32 (!%p162_p7), %s168_s24, 7  ;;  %v292_v17 = vsel (!%p162_p7), %vm290_vm0, 4294967295, %v711_v16  ;;  %350 = vmatprep.mubr.bf16.mxu0 (!%p162_p7), %v712_v18  ;;  %391 = vmatprep.mubr.bf16.mxu1 (!%p162_p7), %v712_v18  ;;  %v197_v52 = vld [vmem:[%s828_s0] sm:$0x3] (!%p162_p7)  ;;  %vm286_vm2 = vcmask (!%p162_p7), 203776   ;;  %v511_v6 = vlaneseq (!%p162_p7) }
  0x1f   : > { %s786_s26 = scalar_lea.vmem (!%p162_p7), [#allocation2], %s614_s25  ;;  %v293_v27 = vsel (!%p162_p7), %vm291_vm1, %v292_v17, 0  ;;  %v713_v4 = vmov (!%p162_p7), 1983009808   ;;  %p191_p8 = scmp.lt.s32.totalorder (!%p162_p7), %s615_s29, 15 }
  0x20   : > { %v198_v19 = vld [vmem:[%s786_s26] sm:$0xff] (!%p162_p7)  ;;  %v199_v21 = vld [vmem:[%s786_s26 + $0x8] sm:$0xff] (!%p162_p7)  ;;  %v200_v34 = vld [vmem:[%s786_s26 + $0x10] sm:$0xff] (!%p162_p7)  ;;  %v509_v5 = vunpack.c.l.s4 (!%p162_p7), %v713_v4  ;;  %v512_v9 = vshrl.u32 (!%p162_p7), %v511_v6, 7 }
  0x21   : > { %v202_v20 = vld [vmem:[%s786_s26 + $0x20] sm:$0xff] (!%p162_p7)  ;;  %v203_v23 = vld [vmem:[%s786_s26 + $0x28] sm:$0xff] (!%p162_p7)  ;;  %v204_v37 = vld [vmem:[%s786_s26 + $0x30] sm:$0xff] (!%p162_p7) }
  0x22   : > { %v618_v22 = vcombine.high (!%p162_p7), %v198_v19, %v202_v20  ;;  %v617_v24 = vcombine.low (!%p162_p7), %v198_v19, %v202_v20  ;;  %v206_v25 = vld [vmem:[%s786_s26 + $0x40] sm:$0xff] (!%p162_p7)  ;;  %v620_v28 = vcombine.high (!%p162_p7), %v199_v21, %v203_v23  ;;  %v619_v29 = vcombine.low (!%p162_p7), %v199_v21, %v203_v23  ;;  %v207_v31 = vld [vmem:[%s786_s26 + $0x48] sm:$0xff] (!%p162_p7)  ;;  %v201_v38 = vld [vmem:[%s786_s26 + $0x18] sm:$0xff] (!%p162_p7) }
  0x23   : > { %v210_v26 = vld [vmem:[%s786_s26 + $0x60] sm:$0x11] (!%p162_p7)  ;;  %v211_v32 = vld [vmem:[%s786_s26 + $0x68] sm:$0x11] (!%p162_p7)  ;;  %v205_v39 = vld [vmem:[%s786_s26 + $0x38] sm:$0xff] (!%p162_p7)  ;;  %v622_v47 = vcombine.high (!%p162_p7), %v200_v34, %v204_v37  ;;  %v621_v53 = vcombine.low (!%p162_p7), %v200_v34, %v204_v37  ;;  %v510_v8 = vunpack.c.0.s8 (!%p162_p7), %v509_v5 }
  0x24   : > { %v626_v30 = vcombine.high (!%p162_p7), %v206_v25, %v210_v26  ;;  %v625_v33 = vcombine.low (!%p162_p7), %v206_v25, %v210_v26  ;;  %318 = vmatprep.subr.bf16.mxu0 (!%p162_p7), %v618_v22  ;;  %v628_v35 = vcombine.high (!%p162_p7), %v207_v31, %v211_v32  ;;  %v627_v36 = vcombine.low (!%p162_p7), %v207_v31, %v211_v32  ;;  %v208_v42 = vld [vmem:[%s786_s26 + $0x50] sm:$0xff] (!%p162_p7)  ;;  %v209_v44 = vld [vmem:[%s786_s26 + $0x58] sm:$0xff] (!%p162_p7) }
  0x25   : > { %359 = vmatprep.subr.bf16.mxu1 %v620_v28  ;;  %319 = vmatpush1.bf16.msra.mxu0 %v617_v24  ;;  %v212_v43 = vld [vmem:[%s786_s26 + $0x70] sm:$0x11]  ;;  %v213_v48 = vld [vmem:[%s786_s26 + $0x78] sm:$0x11]  ;;  %v624_v49 = vcombine.high %v201_v38, %v205_v39  ;;  %v623_v55 = vcombine.low %v201_v38, %v205_v39  ;;  %s835_s29 = smov (!%p191_p8, %s615_s29), 15  ;;  %v513_v19 = vsub.s32 %v510_v8, %v512_v9 }
  0x26   : > { %v298_v40 = vand.u32 %v626_v30, %v293_v27  ;;  %v295_v41 = vand.u32 %v625_v33, %v293_v27  ;;  %360 = vmatpush1.bf16.msra.mxu1 %v619_v29  ;;  %v304_v45 = vand.u32 %v628_v35, %v293_v27  ;;  %v301_v46 = vand.u32 %v627_v36, %v293_v27  ;;  %s616_s30 = sshll.u32 %s835_s29, 1 }
  0x27   : > { %v630_v50 = vcombine.high %v208_v42, %v212_v43  ;;  %v632_v51 = vcombine.high %v209_v44, %v213_v48  ;;  %v629_v54 = vcombine.low %v208_v42, %v212_v43  ;;  %v631_v57 = vcombine.low %v209_v44, %v213_v48  ;;  %s194_s5 = scalar_lea.vmem %s830_s2, %s616_s30 }
  0x28   : > { %320 = vmatprep.subr.bf16.mxu0 %v298_v40  ;;  %361 = vmatprep.subr.bf16.mxu1 %v304_v45 }
  0x29   : > { %321 = vmatpush1.bf16.msra.mxu0 %v295_v41  ;;  %v310_v56 = vand.u32 %v630_v50, %v293_v27  ;;  %v316_v58 = vand.u32 %v632_v51, %v293_v27  ;;  %v307_v59 = vand.u32 %v629_v54, %v293_v27  ;;  %v313_v60 = vand.u32 %v631_v57, %v293_v27 }
  0x2a   : > { %362 = vmatpush1.bf16.msra.mxu1 %v301_v46  ;;  %400 = vmatprep.subr.bf16.mxu0 %v622_v47 }
  0x2b   : > { %441 = vmatprep.subr.bf16.mxu1 %v624_v49 }
  0x2c   : > { %633 = vmatmul.mubr.msk.bf16.vlgmr.msra.gmra.mrb[0].mxu0 %vm286_vm2, %v197_v52 }
  0x2d   : > { %634 = vmatmul.mubr.msk.bf16.vlgmr.msra.gmra.mrb[0].mxu1 %vm286_vm2, %v197_v52  ;;  %401 = vmatpush1.bf16.msra.mxu0 %v621_v53 }
  0x2e   : > { %442 = vmatpush1.bf16.msra.mxu1 %v623_v55  ;;  %402 = vmatprep.subr.bf16.mxu0 %v310_v56 }
  0x2f   : > { %443 = vmatprep.subr.bf16.mxu1 %v316_v58  ;;  %432 = vmatprep.mubr.bf16.mxu0 %v712_v18 }
  0x30   : > { %473 = vmatprep.mubr.bf16.mxu1 %v712_v18 }
  0x31   : > { %403 = vmatpush1.bf16.msra.mxu0 %v307_v59 }
  0x32   : > { %444 = vmatpush1.bf16.msra.mxu1 %v313_v60 }
  0x34   : > { %635 = vmatmul.mubr.msk.bf16.vlgmr.msra.gmra.mrb[4].mxu0 %vm286_vm2, %v197_v52 }
  0x35   : > { %636 = vmatmul.mubr.msk.bf16.vlgmr.msra.gmra.mrb[4].mxu1 %vm286_vm2, %v197_v52 }
  0xff   : > { %v352_v61 = vpop.f32.mrb[0].mxu0 }
 0x100   : > { %671 = vtanh.f32 %v352_v61  ;;  %v393_v62 = vpop.f32.mrb[0].mxu1  ;;  %v354_v63 = vpop.f32.mrb[1].mxu0 }
 0x101   : > { %673 = vtanh.f32 %v393_v62  ;;  %v395_v0 = vpop.f32.mrb[1].mxu1  ;;  %v356_v1 = vpop.f32.mrb[2].mxu0 }
 0x102   : > { %675 = vtanh.f32 %v354_v63  ;;  %v397_v2 = vpop.f32.mrb[2].mxu1  ;;  %v357_v3 = vpop.f32.mrb[3].mxu0 }
 0x103   : > { %677 = vtanh.f32 %v395_v0  ;;  %v398_v7 = vpop.f32.mrb[3].mxu1 }
 0x107   : > { %v434_v10 = vpop.f32.mrb[4].mxu0 }
 0x108   : > { %679 = vtanh.f32 %v434_v10  ;;  %v475_v11 = vpop.f32.mrb[4].mxu1  ;;  %v436_v12 = vpop.f32.mrb[5].mxu0 }
 0x109   : > { %681 = vtanh.f32 %v475_v11  ;;  %v477_v13 = vpop.f32.mrb[5].mxu1  ;;  %v438_v14 = vpop.f32.mrb[6].mxu0 }
 0x10a   : > { %v672_v15 = vpop.eup %671  ;;  %683 = vtanh.f32 %v436_v12  ;;  %v479_v16 = vpop.f32.mrb[6].mxu1 }
 0x10b   : > { %v439_v17 = vpop.f32.mrb[7].mxu0  ;;  %v674_v18 = vpop.eup %673  ;;  %685 = vtanh.f32 %v477_v13 }
 0x10c   : > { %v480_v20 = vpop.f32.mrb[7].mxu1  ;;  %v676_v21 = vpop.eup %675 }
 0x10d   : > { %v678_v22 = vpop.eup %677  ;;  %v637_v23 = vpack.c.bf16 %v676_v21, %v672_v15 }
 0x10e   : > { %v638_v24 = vpack.c.bf16 %v678_v22, %v674_v18 }
 0x10f   : > { %v514_v25 = vrot.slane %v637_v23, %v513_v19 }
 0x110   : > { %v521_v26 = vrot.slane %v638_v24, %v513_v19 }
 0x112   : > { %v680_v27 = vpop.eup %679  ;;  %v522_v28 = vcombine.low %v514_v25, %v521_v26 }
 0x113   : > { %v682_v29 = vpop.eup %681 }
 0x114   : > { %v684_v30 = vpop.eup %683  ;;  %542 = vst [vmem:[%s194_s5] sm:$0xff] %v522_v28 }
 0x115   : > { %v686_v31 = vpop.eup %685  ;;  %v639_v32 = vpack.c.bf16 %v684_v30, %v680_v27 }
 0x116   : > { %v640_v33 = vpack.c.bf16 %v686_v31, %v682_v29 }
 0x117   : > { %v531_v34 = vrot.slane %v639_v32, %v513_v19 }
 0x118   : > { %v538_v35 = vrot.slane %v640_v33, %v513_v19 }
 0x11a   : > { %v539_v36 = vcombine.low %v531_v34, %v538_v35 }
 0x11c   : > { %543 = vst [vmem:[%s194_s5 + $0x8] sm:$0xff] %v539_v36 }
 0x11d PF: > { %p9_p9 = scmp.ge.s32.totalorder %s746_s13, 4   ;;  %s831_s9 = smov %s705_s10 }
 0x11e   : > { %s832_s10 = smov %s755_s16  ;;  %s833_s11 = smov %s746_s13 }
 0x11f   :  { %11 = sbr.rel (!%p9_p9) target bundleno = 2 (0x2), region = 86 }

// kernel: lenet5_filocl_forward.5
= control target key start
LH: loop header
LB: loop body
LE: loop exit
PB: predicated region body
PF: predicated region fallthrough
CT: control target
= control target key end

     0   :  { %v1487_v1 = vmov 0   ;;  %vm182_vm0 = vcmask 1041408   ;;  %vm178_vm1 = vcmask 818176   ;;  %vm1075_vm2 = vcmask 1042432   ;;  %s1893_s2 = inlined_call_operand.vmem [shape: bf16[4,100,392], index: 2, kind: input, shape index: {}]   ;;  %s1894_s0 = inlined_call_operand.vmem [shape: bf16[6,100], index: 0, kind: input, shape index: {}]   ;;  %s1895_s1 = inlined_call_operand.vmem [shape: f32[6,1], index: 1, kind: input, shape index: {}]   ;;  %s1896_s3 = inlined_call_operand.vmem [shape: bf16[6,392], index: 3, kind: output, shape index: {}]  }
   0x1   :  { %v1295_v0 = vld [vmem:[%s1893_s2 + $0x4] ss:$16 sps:$4 sm:$0xff]   ;;  %227 = vmatprep.mubr.bf16.mxu0 %v1487_v1  ;;  %268 = vmatprep.mubr.bf16.mxu1 %v1487_v1  ;;  %v1297_v2 = vld [vmem:[%s1893_s2 + $0xc] ss:$16 sps:$4 sm:$0xff]   ;;  %v1299_v3 = vld [vmem:[%s1893_s2] ss:$16 sps:$4 sm:$0xff]  }
   0x2   :  { %1294 = vset.pattern.permute.xlu0 %v1487_v1  ;;  %195 = vmatprep.subr.bf16.mxu0 %v1295_v0  ;;  %v1300_v4 = vld [vmem:[%s1893_s2 + $0x8] ss:$16 sps:$4 sm:$0xff]   ;;  %v1301_v5 = vld [vmem:[%s1893_s2 + $0x24] ss:$16 sps:$4 sm:$0xff]   ;;  %v1303_v6 = vld [vmem:[%s1893_s2 + $0x2c] ss:$16 sps:$4 sm:$0xff]  }
   0x3   :  { %236 = vmatprep.subr.bf16.mxu1 %v1297_v2  ;;  %196 = vmatpush1.bf16.msra.mxu0 %v1299_v3  ;;  %v1305_v7 = vld [vmem:[%s1893_s2 + $0x20] ss:$16 sps:$4 sm:$0xff]   ;;  %v1306_v8 = vld [vmem:[%s1893_s2 + $0x28] ss:$16 sps:$4 sm:$0xff]   ;;  %v1307_v9 = vld [vmem:[%s1893_s2 + $0x44] ss:$16 sps:$4 sm:$0xff]  }
   0x4   :  { %237 = vmatpush1.bf16.msra.mxu1 %v1300_v4  ;;  %197 = vmatprep.subr.bf16.mxu0 %v1301_v5  ;;  %v1309_v10 = vld [vmem:[%s1893_s2 + $0x4c] ss:$16 sps:$4 sm:$0xff]   ;;  %v1311_v11 = vld [vmem:[%s1893_s2 + $0x40] ss:$16 sps:$4 sm:$0xff]   ;;  %v1312_v12 = vld [vmem:[%s1893_s2 + $0x48] ss:$16 sps:$4 sm:$0xff]  }
   0x5   :  { %238 = vmatprep.subr.bf16.mxu1 %v1303_v6  ;;  %v1313_v13 = vld [vmem:[%s1893_s2 + $0x64] ss:$16 sps:$4 sm:$0xff]   ;;  %v1315_v14 = vld [vmem:[%s1893_s2 + $0x6c] ss:$16 sps:$4 sm:$0xff]   ;;  %v1317_v15 = vld [vmem:[%s1893_s2 + $0x60] ss:$16 sps:$4 sm:$0xff]  }
   0x6   :  { %v1318_v16 = vld [vmem:[%s1893_s2 + $0x68] ss:$16 sps:$4 sm:$0xff]   ;;  %v1319_v17 = vld [vmem:[%s1893_s2 + $0x84] ss:$16 sps:$4 sm:$0xff]   ;;  %v1321_v18 = vld [vmem:[%s1893_s2 + $0x8c] ss:$16 sps:$4 sm:$0xff]  }
   0x7   :  { %198 = vmatpush1.bf16.msra.mxu0 %v1305_v7  ;;  %v1323_v19 = vld [vmem:[%s1893_s2 + $0x80] ss:$16 sps:$4 sm:$0xff]   ;;  %v1324_v20 = vld [vmem:[%s1893_s2 + $0x88] ss:$16 sps:$4 sm:$0xff]   ;;  %v1325_v21 = vld [vmem:[%s1893_s2 + $0xa4] ss:$16 sps:$4 sm:$0xff]  }
   0x8   :  { %239 = vmatpush1.bf16.msra.mxu1 %v1306_v8  ;;  %199 = vmatprep.subr.bf16.mxu0 %v1307_v9  ;;  %v1327_v22 = vld [vmem:[%s1893_s2 + $0xac] ss:$16 sps:$4 sm:$0xff]   ;;  %v41_v23 = vld [vmem:[%s1893_s2 + $0xc0] sm:$0x33]  ;;  %v1330_v26 = vld [vmem:[%s1893_s2 + $0xa8] ss:$16 sps:$4 sm:$0xff]  }
   0x9   :  { %240 = vmatprep.subr.bf16.mxu1 %v1309_v10  ;;  %v42_v24 = vld [vmem:[%s1893_s2 + $0xc8] sm:$0x33]  ;;  %v1329_v25 = vld [vmem:[%s1893_s2 + $0xa0] ss:$16 sps:$4 sm:$0xff]   ;;  %v1108_v27 = vcombine.high %v41_v23, %v41_v23  ;;  %v1107_v29 = vcombine.low %v41_v23, %v41_v23  ;;  %v1337_v31 = vld [vmem:[%s1893_s2 + $0xd4] ss:$16 sps:$4 sm:$0xff]  }
   0xa   :  { %v1110_v28 = vcombine.high %v42_v24, %v42_v24  ;;  %v1109_v30 = vcombine.low %v42_v24, %v42_v24  ;;  %v1340_v34 = vld [vmem:[%s1893_s2 + $0xdc] ss:$16 sps:$4 sm:$0xff]   ;;  %v1602_v35 = vld [vmem:[%s1894_s0] sm:$0x7]  ;;  %v1338_v37 = vld [vmem:[%s1893_s2 + $0xd8] ss:$16 sps:$4 sm:$0xff]  }
   0xb   :  { %200 = vmatpush1.bf16.msra.mxu0 %v1311_v11  ;;  %v184_v32 = vsel %vm182_vm0, %v1107_v29, 0  ;;  %v1335_v36 = vld [vmem:[%s1893_s2 + $0xd0] ss:$16 sps:$4 sm:$0xff]   ;;  %v1343_v38 = vld [vmem:[%s1893_s2 + $0xf4] ss:$16 sps:$4 sm:$0xff]   ;;  %vm1076_vm3 = vcmask 63492  }
   0xc   :  { %241 = vmatpush1.bf16.msra.mxu1 %v1312_v12  ;;  %201 = vmatprep.subr.bf16.mxu0 %v1313_v13  ;;  %v190_v33 = vsel %vm182_vm0, %v1109_v30, 0  ;;  %v1346_v39 = vld [vmem:[%s1893_s2 + $0xfc] ss:$16 sps:$4 sm:$0xff]   ;;  %v1341_v40 = vld [vmem:[%s1893_s2 + $0xf0] ss:$16 sps:$4 sm:$0xff]   ;;  %vm1077_vm4 = vmor %vm1076_vm3, %vm1075_vm2 }
   0xd   :  { %242 = vmatprep.subr.bf16.mxu1 %v1315_v14  ;;  %v1344_v41 = vld [vmem:[%s1893_s2 + $0xf8] ss:$16 sps:$4 sm:$0xff]   ;;  %v1349_v42 = vld [vmem:[%s1893_s2 + $0x114] ss:$16 sps:$4 sm:$0xff]   ;;  %v1352_v43 = vld [vmem:[%s1893_s2 + $0x11c] ss:$16 sps:$4 sm:$0xff]  }
   0xe   :  { %v1347_v44 = vld [vmem:[%s1893_s2 + $0x110] ss:$16 sps:$4 sm:$0xff]   ;;  %v1350_v45 = vld [vmem:[%s1893_s2 + $0x118] ss:$16 sps:$4 sm:$0xff]   ;;  %v1355_v46 = vld [vmem:[%s1893_s2 + $0x134] ss:$16 sps:$4 sm:$0xff]  }
   0xf   :  { %202 = vmatpush1.bf16.msra.mxu0 %v1317_v15  ;;  %v1358_v47 = vld [vmem:[%s1893_s2 + $0x13c] ss:$16 sps:$4 sm:$0xff]   ;;  %v1353_v48 = vld [vmem:[%s1893_s2 + $0x130] ss:$16 sps:$4 sm:$0xff]   ;;  %v1356_v49 = vld [vmem:[%s1893_s2 + $0x138] ss:$16 sps:$4 sm:$0xff]  }
  0x10   :  { %243 = vmatpush1.bf16.msra.mxu1 %v1318_v16  ;;  %203 = vmatprep.subr.bf16.mxu0 %v1319_v17  ;;  %v1361_v50 = vld [vmem:[%s1893_s2 + $0x154] ss:$16 sps:$4 sm:$0xff]   ;;  %v1364_v51 = vld [vmem:[%s1893_s2 + $0x15c] ss:$16 sps:$4 sm:$0xff]   ;;  %v1359_v52 = vld [vmem:[%s1893_s2 + $0x150] ss:$16 sps:$4 sm:$0xff]  }
  0x11   :  { %244 = vmatprep.subr.bf16.mxu1 %v1321_v18  ;;  %v1362_v53 = vld [vmem:[%s1893_s2 + $0x158] ss:$16 sps:$4 sm:$0xff]   ;;  %v1367_v54 = vld [vmem:[%s1893_s2 + $0x174] ss:$16 sps:$4 sm:$0xff]   ;;  %v1370_v55 = vld [vmem:[%s1893_s2 + $0x17c] ss:$16 sps:$4 sm:$0xff]  }
  0x12   :  { %v1139_v56 = vld [vmem:[%s1893_s2 + $0x190] sm:$0x33]  ;;  %v1140_v57 = vld [vmem:[%s1893_s2 + $0x198] sm:$0x33]  ;;  %v16_v17 = vld [vmem:[%s1895_s1] sm:$0x3f] }
  0x13   :  { %204 = vmatpush1.bf16.msra.mxu0 %v1323_v19  ;;  %v1365_v58 = vld [vmem:[%s1893_s2 + $0x170] ss:$16 sps:$4 sm:$0xff]   ;;  %v1368_v59 = vld [vmem:[%s1893_s2 + $0x178] ss:$16 sps:$4 sm:$0xff]   ;;  %v1166_v60 = vcombine.high %v1139_v56, %v1139_v56  ;;  %v1168_v61 = vcombine.high %v1140_v57, %v1140_v57  ;;  %v1165_v62 = vcombine.low %v1139_v56, %v1139_v56  ;;  %v1167_v63 = vcombine.low %v1140_v57, %v1140_v57  ;;  %v1377_v0 = vld [vmem:[%s1893_s2 + $0x1a4] ss:$16 sps:$4 sm:$0xff]  }
  0x14   :  { %245 = vmatpush1.bf16.msra.mxu1 %v1324_v20  ;;  %205 = vmatprep.subr.bf16.mxu0 %v1325_v21  ;;  %v1380_v4 = vld [vmem:[%s1893_s2 + $0x1ac] ss:$16 sps:$4 sm:$0xff]   ;;  %v1375_v5 = vld [vmem:[%s1893_s2 + $0x1a0] ss:$16 sps:$4 sm:$0xff]   ;;  %v1378_v6 = vld [vmem:[%s1893_s2 + $0x1a8] ss:$16 sps:$4 sm:$0xff]  }
  0x15   :  { %246 = vmatprep.subr.bf16.mxu1 %v1327_v22  ;;  %v439_v2 = vsel %vm182_vm0, %v1165_v62, 0  ;;  %v445_v3 = vsel %vm182_vm0, %v1167_v63, 0  ;;  %v1383_v7 = vld [vmem:[%s1893_s2 + $0x1c4] ss:$16 sps:$4 sm:$0xff]   ;;  %v1386_v8 = vld [vmem:[%s1893_s2 + $0x1cc] ss:$16 sps:$4 sm:$0xff]   ;;  %45 = vperm.xlu0 %1294, %v16_v17  }
  0x16   :  { %v1381_v9 = vld [vmem:[%s1893_s2 + $0x1c0] ss:$16 sps:$4 sm:$0xff]   ;;  %v1384_v10 = vld [vmem:[%s1893_s2 + $0x1c8] ss:$16 sps:$4 sm:$0xff]   ;;  %v1389_v11 = vld [vmem:[%s1893_s2 + $0x1e4] ss:$16 sps:$4 sm:$0xff]  }
  0x17   :  { %206 = vmatpush1.bf16.msra.mxu0 %v1329_v25  ;;  %v1392_v12 = vld [vmem:[%s1893_s2 + $0x1ec] ss:$16 sps:$4 sm:$0xff]   ;;  %v1387_v13 = vld [vmem:[%s1893_s2 + $0x1e0] ss:$16 sps:$4 sm:$0xff]   ;;  %v1390_v14 = vld [vmem:[%s1893_s2 + $0x1e8] ss:$16 sps:$4 sm:$0xff]  }
  0x18   :  { %247 = vmatpush1.bf16.msra.mxu1 %v1330_v26  ;;  %1111 = vmatprep.subr.msk.bf16.mxu0 %vm182_vm0, %v1108_v27  ;;  %v1395_v15 = vld [vmem:[%s1893_s2 + $0x204] ss:$16 sps:$4 sm:$0xff]   ;;  %v1398_v16 = vld [vmem:[%s1893_s2 + $0x20c] ss:$16 sps:$4 sm:$0xff]   ;;  %v1393_v18 = vld [vmem:[%s1893_s2 + $0x200] ss:$16 sps:$4 sm:$0xff]  }
  0x19   :  { %1113 = vmatprep.subr.msk.bf16.mxu1 %vm182_vm0, %v1110_v28  ;;  %v1396_v19 = vld [vmem:[%s1893_s2 + $0x208] ss:$16 sps:$4 sm:$0xff]   ;;  %v1401_v20 = vld [vmem:[%s1893_s2 + $0x224] ss:$16 sps:$4 sm:$0xff]   ;;  %v1404_v21 = vld [vmem:[%s1893_s2 + $0x22c] ss:$16 sps:$4 sm:$0xff]  }
  0x1a   :  { %v1399_v22 = vld [vmem:[%s1893_s2 + $0x220] ss:$16 sps:$4 sm:$0xff]   ;;  %v1402_v23 = vld [vmem:[%s1893_s2 + $0x228] ss:$16 sps:$4 sm:$0xff]   ;;  %v1407_v24 = vld [vmem:[%s1893_s2 + $0x244] ss:$16 sps:$4 sm:$0xff]  }
  0x1b   :  { %208 = vmatpush1.bf16.msra.mxu0 %v184_v32  ;;  %v1410_v25 = vld [vmem:[%s1893_s2 + $0x24c] ss:$16 sps:$4 sm:$0xff]   ;;  %v1197_v26 = vld [vmem:[%s1893_s2 + $0x260] sm:$0x33]  ;;  %v1408_v29 = vld [vmem:[%s1893_s2 + $0x248] ss:$16 sps:$4 sm:$0xff]  }
  0x1c   :  { %249 = vmatpush1.bf16.msra.mxu1 %v190_v33  ;;  %450 = vmatprep.subr.bf16.mxu0 %v1337_v31  ;;  %v1198_v27 = vld [vmem:[%s1893_s2 + $0x268] sm:$0x33]  ;;  %v1405_v28 = vld [vmem:[%s1893_s2 + $0x240] ss:$16 sps:$4 sm:$0xff]   ;;  %v1224_v30 = vcombine.high %v1197_v26, %v1197_v26  ;;  %v1223_v32 = vcombine.low %v1197_v26, %v1197_v26  ;;  %v1447_v56 = vld [vmem:[%s1893_s2 + $0x314] ss:$16 sps:$4 sm:$0xff]  }
  0x1d   :  { %491 = vmatprep.subr.bf16.mxu1 %v1340_v34  ;;  %v1226_v31 = vcombine.high %v1198_v27, %v1198_v27  ;;  %v1225_v33 = vcombine.low %v1198_v27, %v1198_v27  ;;  %v1450_v57 = vld [vmem:[%s1893_s2 + $0x31c] ss:$16 sps:$4 sm:$0xff]  }
  0x1e   :  { %1112 = vmatmul.mubr.msk.bf16.vlgmr.msra.gmra.mrb[0].mxu0 %vm178_vm1, %v1602_v35  ;;  %v698_v34 = vsel %vm182_vm0, %v1223_v32, 0 }
  0x1f   :  { %1114 = vmatmul.mubr.msk.bf16.vlgmr.msra.gmra.mrb[0].mxu1 %vm178_vm1, %v1602_v35  ;;  %451 = vmatpush1.bf16.msra.mxu0 %v1335_v36  ;;  %v704_v36 = vsel %vm182_vm0, %v1225_v33, 0 }
  0x20   :  { %492 = vmatpush1.bf16.msra.mxu1 %v1338_v37  ;;  %452 = vmatprep.subr.bf16.mxu0 %v1343_v38  ;;  %v1417_v37 = vld [vmem:[%s1893_s2 + $0x274] ss:$16 sps:$4 sm:$0xff]   ;;  %v1420_v38 = vld [vmem:[%s1893_s2 + $0x27c] ss:$16 sps:$4 sm:$0xff]  }
  0x21   :  { %493 = vmatprep.subr.bf16.mxu1 %v1346_v39  ;;  %482 = vmatprep.mubr.bf16.mxu0 %v1487_v1  ;;  %v1415_v39 = vld [vmem:[%s1893_s2 + $0x270] ss:$16 sps:$4 sm:$0xff]  }
  0x22   :  { %523 = vmatprep.mubr.bf16.mxu1 %v1487_v1 }
  0x23   :  { %453 = vmatpush1.bf16.msra.mxu0 %v1341_v40  ;;  %v1418_v40 = vld [vmem:[%s1893_s2 + $0x278] ss:$16 sps:$4 sm:$0xff]  }
  0x24   :  { %494 = vmatpush1.bf16.msra.mxu1 %v1344_v41  ;;  %454 = vmatprep.subr.bf16.mxu0 %v1349_v42  ;;  %v1423_v41 = vld [vmem:[%s1893_s2 + $0x294] ss:$16 sps:$4 sm:$0xff]   ;;  %v1426_v42 = vld [vmem:[%s1893_s2 + $0x29c] ss:$16 sps:$4 sm:$0xff]  }
  0x25   :  { %495 = vmatprep.subr.bf16.mxu1 %v1352_v43  ;;  %v1421_v43 = vld [vmem:[%s1893_s2 + $0x290] ss:$16 sps:$4 sm:$0xff]  }
  0x27   :  { %455 = vmatpush1.bf16.msra.mxu0 %v1347_v44  ;;  %v1424_v44 = vld [vmem:[%s1893_s2 + $0x298] ss:$16 sps:$4 sm:$0xff]  }
  0x28   :  { %496 = vmatpush1.bf16.msra.mxu1 %v1350_v45  ;;  %456 = vmatprep.subr.bf16.mxu0 %v1355_v46  ;;  %v1429_v45 = vld [vmem:[%s1893_s2 + $0x2b4] ss:$16 sps:$4 sm:$0xff]   ;;  %v1432_v46 = vld [vmem:[%s1893_s2 + $0x2bc] ss:$16 sps:$4 sm:$0xff]  }
  0x29   :  { %497 = vmatprep.subr.bf16.mxu1 %v1358_v47  ;;  %v1427_v47 = vld [vmem:[%s1893_s2 + $0x2b0] ss:$16 sps:$4 sm:$0xff]  }
  0x2b   :  { %457 = vmatpush1.bf16.msra.mxu0 %v1353_v48  ;;  %v1430_v48 = vld [vmem:[%s1893_s2 + $0x2b8] ss:$16 sps:$4 sm:$0xff]  }
  0x2c   :  { %498 = vmatpush1.bf16.msra.mxu1 %v1356_v49  ;;  %458 = vmatprep.subr.bf16.mxu0 %v1361_v50  ;;  %v1435_v49 = vld [vmem:[%s1893_s2 + $0x2d4] ss:$16 sps:$4 sm:$0xff]   ;;  %v1433_v50 = vld [vmem:[%s1893_s2 + $0x2d0] ss:$16 sps:$4 sm:$0xff]  }
  0x2d   :  { %499 = vmatprep.subr.bf16.mxu1 %v1364_v51  ;;  %v1436_v51 = vld [vmem:[%s1893_s2 + $0x2d8] ss:$16 sps:$4 sm:$0xff]  }
  0x2f   :  { %459 = vmatpush1.bf16.msra.mxu0 %v1359_v52  ;;  %v1441_v52 = vld [vmem:[%s1893_s2 + $0x2f4] ss:$16 sps:$4 sm:$0xff]  }
  0x30   :  { %500 = vmatpush1.bf16.msra.mxu1 %v1362_v53  ;;  %460 = vmatprep.subr.bf16.mxu0 %v1367_v54  ;;  %v1444_v53 = vld [vmem:[%s1893_s2 + $0x2fc] ss:$16 sps:$4 sm:$0xff]   ;;  %v1439_v54 = vld [vmem:[%s1893_s2 + $0x2f0] ss:$16 sps:$4 sm:$0xff]  }
  0x31   :  { %501 = vmatprep.subr.bf16.mxu1 %v1370_v55  ;;  %v1442_v55 = vld [vmem:[%s1893_s2 + $0x2f8] ss:$16 sps:$4 sm:$0xff]  }
  0x33   :  { %461 = vmatpush1.bf16.msra.mxu0 %v1365_v58  ;;  %v1255_v58 = vld [vmem:[%s1893_s2 + $0x330] sm:$0x33] }
  0x34   :  { %502 = vmatpush1.bf16.msra.mxu1 %v1368_v59  ;;  %1169 = vmatprep.subr.msk.bf16.mxu0 %vm182_vm0, %v1166_v60  ;;  %v1256_v59 = vld [vmem:[%s1893_s2 + $0x338] sm:$0x33]  ;;  %v1445_v60 = vld [vmem:[%s1893_s2 + $0x310] ss:$16 sps:$4 sm:$0xff]   ;;  %v1282_v62 = vcombine.high %v1255_v58, %v1255_v58 }
  0x35   :  { %1171 = vmatprep.subr.msk.bf16.mxu1 %vm182_vm0, %v1168_v61  ;;  %v1448_v61 = vld [vmem:[%s1893_s2 + $0x318] ss:$16 sps:$4 sm:$0xff]   ;;  %v1284_v63 = vcombine.high %v1256_v59, %v1256_v59 }
  0x37   :  { %463 = vmatpush1.bf16.msra.mxu0 %v439_v2  ;;  %v1283_v2 = vcombine.low %v1256_v59, %v1256_v59 }
  0x38   :  { %504 = vmatpush1.bf16.msra.mxu1 %v445_v3  ;;  %709 = vmatprep.subr.bf16.mxu0 %v1377_v0  ;;  %v1281_v0 = vcombine.low %v1255_v58, %v1255_v58 }
  0x39   :  { %750 = vmatprep.subr.bf16.mxu1 %v1380_v4  ;;  %v963_v4 = vsel %vm182_vm0, %v1283_v2, 0 }
  0x3a   :  { %1170 = vmatmul.mubr.msk.bf16.vlgmr.msra.gmra.mrb[4].mxu0 %vm178_vm1, %v1602_v35  ;;  %v957_v3 = vsel %vm182_vm0, %v1281_v0, 0 }
  0x3b   :  { %1172 = vmatmul.mubr.msk.bf16.vlgmr.msra.gmra.mrb[4].mxu1 %vm178_vm1, %v1602_v35  ;;  %710 = vmatpush1.bf16.msra.mxu0 %v1375_v5 }
  0x3c   :  { %751 = vmatpush1.bf16.msra.mxu1 %v1378_v6  ;;  %711 = vmatprep.subr.bf16.mxu0 %v1383_v7 }
  0x3d   :  { %752 = vmatprep.subr.bf16.mxu1 %v1386_v8  ;;  %741 = vmatprep.mubr.bf16.mxu0 %v1487_v1 }
  0x3e   :  { %782 = vmatprep.mubr.bf16.mxu1 %v1487_v1 }
  0x3f   :  { %712 = vmatpush1.bf16.msra.mxu0 %v1381_v9 }
  0x40   :  { %753 = vmatpush1.bf16.msra.mxu1 %v1384_v10  ;;  %713 = vmatprep.subr.bf16.mxu0 %v1389_v11 }
  0x41   :  { %754 = vmatprep.subr.bf16.mxu1 %v1392_v12 }
  0x43   :  { %714 = vmatpush1.bf16.msra.mxu0 %v1387_v13 }
  0x44   :  { %755 = vmatpush1.bf16.msra.mxu1 %v1390_v14  ;;  %715 = vmatprep.subr.bf16.mxu0 %v1395_v15 }
  0x45   :  { %756 = vmatprep.subr.bf16.mxu1 %v1398_v16 }
  0x47   :  { %716 = vmatpush1.bf16.msra.mxu0 %v1393_v18 }
  0x48   :  { %757 = vmatpush1.bf16.msra.mxu1 %v1396_v19  ;;  %717 = vmatprep.subr.bf16.mxu0 %v1401_v20 }
  0x49   :  { %758 = vmatprep.subr.bf16.mxu1 %v1404_v21 }
  0x4b   :  { %718 = vmatpush1.bf16.msra.mxu0 %v1399_v22 }
  0x4c   :  { %759 = vmatpush1.bf16.msra.mxu1 %v1402_v23  ;;  %719 = vmatprep.subr.bf16.mxu0 %v1407_v24 }
  0x4d   :  { %760 = vmatprep.subr.bf16.mxu1 %v1410_v25 }
  0x4f   :  { %720 = vmatpush1.bf16.msra.mxu0 %v1405_v28 }
  0x50   :  { %761 = vmatpush1.bf16.msra.mxu1 %v1408_v29  ;;  %1227 = vmatprep.subr.msk.bf16.mxu0 %vm182_vm0, %v1224_v30 }
  0x51   :  { %1229 = vmatprep.subr.msk.bf16.mxu1 %vm182_vm0, %v1226_v31 }
  0x53   :  { %722 = vmatpush1.bf16.msra.mxu0 %v698_v34 }
  0x54   :  { %763 = vmatpush1.bf16.msra.mxu1 %v704_v36  ;;  %968 = vmatprep.subr.bf16.mxu0 %v1417_v37 }
  0x55   :  { %1009 = vmatprep.subr.bf16.mxu1 %v1420_v38 }
  0x56   :  { %1228 = vmatmul.mubr.msk.bf16.vlgmr.msra.gmra.mrb[8].mxu0 %vm178_vm1, %v1602_v35 }
  0x57   :  { %1230 = vmatmul.mubr.msk.bf16.vlgmr.msra.gmra.mrb[8].mxu1 %vm178_vm1, %v1602_v35  ;;  %969 = vmatpush1.bf16.msra.mxu0 %v1415_v39 }
  0x58   :  { %1010 = vmatpush1.bf16.msra.mxu1 %v1418_v40  ;;  %970 = vmatprep.subr.bf16.mxu0 %v1423_v41 }
  0x59   :  { %1011 = vmatprep.subr.bf16.mxu1 %v1426_v42  ;;  %1000 = vmatprep.mubr.bf16.mxu0 %v1487_v1 }
  0x5a   :  { %1041 = vmatprep.mubr.bf16.mxu1 %v1487_v1  ;;  %v1438_v1 = vld [vmem:[%s1893_s2 + $0x2dc] ss:$16 sps:$4 sm:$0xff]  }
  0x5b   :  { %971 = vmatpush1.bf16.msra.mxu0 %v1421_v43 }
  0x5c   :  { %1012 = vmatpush1.bf16.msra.mxu1 %v1424_v44  ;;  %972 = vmatprep.subr.bf16.mxu0 %v1429_v45 }
  0x5d   :  { %1013 = vmatprep.subr.bf16.mxu1 %v1432_v46 }
  0x5f   :  { %973 = vmatpush1.bf16.msra.mxu0 %v1427_v47 }
  0x60   :  { %1014 = vmatpush1.bf16.msra.mxu1 %v1430_v48  ;;  %974 = vmatprep.subr.bf16.mxu0 %v1435_v49 }
  0x61   :  { %1015 = vmatprep.subr.bf16.mxu1 %v1438_v1 }
  0x63   :  { %975 = vmatpush1.bf16.msra.mxu0 %v1433_v50 }
  0x64   :  { %1016 = vmatpush1.bf16.msra.mxu1 %v1436_v51  ;;  %976 = vmatprep.subr.bf16.mxu0 %v1441_v52 }
  0x65   :  { %1017 = vmatprep.subr.bf16.mxu1 %v1444_v53 }
  0x67   :  { %977 = vmatpush1.bf16.msra.mxu0 %v1439_v54 }
  0x68   :  { %1018 = vmatpush1.bf16.msra.mxu1 %v1442_v55  ;;  %978 = vmatprep.subr.bf16.mxu0 %v1447_v56 }
  0x69   :  { %1019 = vmatprep.subr.bf16.mxu1 %v1450_v57 }
  0x6b   :  { %979 = vmatpush1.bf16.msra.mxu0 %v1445_v60 }
  0x6c   :  { %1020 = vmatpush1.bf16.msra.mxu1 %v1448_v61  ;;  %1285 = vmatprep.subr.msk.bf16.mxu0 %vm182_vm0, %v1282_v62 }
  0x6d   :  { %1287 = vmatprep.subr.msk.bf16.mxu1 %vm182_vm0, %v1284_v63 }
  0x6f   :  { %981 = vmatpush1.bf16.msra.mxu0 %v957_v3 }
  0x70   :  { %1022 = vmatpush1.bf16.msra.mxu1 %v963_v4 }
  0x72   :  { %1286 = vmatmul.mubr.msk.bf16.vlgmr.msra.gmra.mrb[12].mxu0 %vm178_vm1, %v1602_v35 }
  0x73   :  { %1288 = vmatmul.mubr.msk.bf16.vlgmr.msra.gmra.mrb[12].mxu1 %vm178_vm1, %v1602_v35 }
  0x94   :  { %v1869_v13 = vpop.permute.xlu0 %45 }
  0xf1   :  { %v229_v5 = vpop.f32.mrb[0].mxu0 }
  0xf2   :  { %v270_v6 = vpop.f32.mrb[0].mxu1  ;;  %v231_v7 = vpop.f32.mrb[1].mxu0  ;;  %v230_v14 = vadd.f32 %v229_v5, %v1869_v13 }
  0xf3   :  { %v272_v8 = vpop.f32.mrb[1].mxu1  ;;  %v233_v9 = vpop.f32.mrb[2].mxu0  ;;  %v232_v15 = vadd.f32 %v231_v7, %v1869_v13  ;;  %v271_v17 = vadd.f32 %v270_v6, %v1869_v13 }
  0xf4   :  { %v274_v10 = vpop.f32.mrb[2].mxu1  ;;  %v234_v11 = vpop.f32.mrb[3].mxu0  ;;  %v273_v16 = vadd.f32 %v272_v8, %v1869_v13  ;;  %1455 = vtanh.f32 %v230_v14 }
  0xf5   :  { %v275_v12 = vpop.f32.mrb[3].mxu1  ;;  %1457 = vtanh.f32 %v232_v15 }
  0xf6   :  { %1459 = vtanh.f32 %v273_v16 }
  0xf7   :  { %1461 = vtanh.f32 %v271_v17 }
  0xfe   :  { %v1456_v29 = vpop.eup %1455 }
  0xff   :  { %v1458_v30 = vpop.eup %1457 }
 0x100   :  { %v1460_v31 = vpop.eup %1459 }
 0x101   :  { %v1462_v32 = vpop.eup %1461 }
 0x10d   :  { %v484_v35 = vpop.f32.mrb[4].mxu0 }
 0x10e   :  { %v525_v18 = vpop.f32.mrb[4].mxu1  ;;  %v485_v19 = vadd.f32 %v484_v35, %v1869_v13  ;;  %v486_v21 = vpop.f32.mrb[5].mxu0 }
 0x10f   :  { %v526_v20 = vadd.f32 %v525_v18, %v1869_v13  ;;  %v527_v22 = vpop.f32.mrb[5].mxu1  ;;  %v487_v23 = vadd.f32 %v486_v21, %v1869_v13  ;;  %v488_v25 = vpop.f32.mrb[6].mxu0 }
 0x110   :  { %v528_v24 = vadd.f32 %v527_v22, %v1869_v13  ;;  %v529_v26 = vpop.f32.mrb[6].mxu1  ;;  %1463 = vtanh.f32 %v485_v19  ;;  %v489_v27 = vpop.f32.mrb[7].mxu0 }
 0x111   :  { %v530_v28 = vpop.f32.mrb[7].mxu1  ;;  %1465 = vtanh.f32 %v526_v20 }
 0x112   :  { %1467 = vtanh.f32 %v487_v23 }
 0x113   :  { %1469 = vtanh.f32 %v528_v24 }
 0x11a   :  { %v1464_v33 = vpop.eup %1463 }
 0x11b   :  { %v1466_v34 = vpop.eup %1465  ;;  %v536_v36 = vadd.f32 %v1464_v33, %v1456_v29 }
 0x11c   :  { %v1468_v37 = vpop.eup %1467  ;;  %v538_v38 = vadd.f32 %v1466_v34, %v1462_v32 }
 0x11d   :  { %v1470_v39 = vpop.eup %1469  ;;  %v537_v40 = vadd.f32 %v1468_v37, %v1458_v30 }
 0x11e   :  { %v539_v41 = vadd.f32 %v1470_v39, %v1460_v31 }
 0x129   :  { %v743_v42 = vpop.f32.mrb[8].mxu0 }
 0x12a   :  { %v784_v43 = vpop.f32.mrb[8].mxu1  ;;  %v744_v44 = vadd.f32 %v743_v42, %v1869_v13  ;;  %v745_v46 = vpop.f32.mrb[9].mxu0 }
 0x12b   :  { %v785_v45 = vadd.f32 %v784_v43, %v1869_v13  ;;  %v786_v47 = vpop.f32.mrb[9].mxu1  ;;  %v746_v48 = vadd.f32 %v745_v46, %v1869_v13  ;;  %v747_v1 = vpop.f32.mrb[10].mxu0 }
 0x12c   :  { %v787_v49 = vadd.f32 %v786_v47, %v1869_v13  ;;  %v788_v50 = vpop.f32.mrb[10].mxu1  ;;  %1471 = vtanh.f32 %v744_v44  ;;  %v748_v51 = vpop.f32.mrb[11].mxu0 }
 0x12d   :  { %v789_v52 = vpop.f32.mrb[11].mxu1  ;;  %1473 = vtanh.f32 %v785_v45 }
 0x12e   :  { %1475 = vtanh.f32 %v746_v48 }
 0x12f   :  { %1477 = vtanh.f32 %v787_v49 }
 0x136   :  { %v1472_v53 = vpop.eup %1471 }
 0x137   :  { %v1474_v54 = vpop.eup %1473  ;;  %v795_v55 = vadd.f32 %v1472_v53, %v536_v36 }
 0x138   :  { %v1476_v56 = vpop.eup %1475  ;;  %v797_v57 = vadd.f32 %v1474_v54, %v538_v38 }
 0x139   :  { %v1478_v58 = vpop.eup %1477  ;;  %v796_v59 = vadd.f32 %v1476_v56, %v537_v40 }
 0x13a   :  { %v798_v60 = vadd.f32 %v1478_v58, %v539_v41 }
 0x145   :  { %v1002_v61 = vpop.f32.mrb[12].mxu0 }
 0x146   :  { %v1043_v62 = vpop.f32.mrb[12].mxu1  ;;  %v1003_v63 = vadd.f32 %v1002_v61, %v1869_v13  ;;  %v1004_v2 = vpop.f32.mrb[13].mxu0 }
 0x147   :  { %v1044_v0 = vadd.f32 %v1043_v62, %v1869_v13  ;;  %v1045_v3 = vpop.f32.mrb[13].mxu1  ;;  %v1005_v4 = vadd.f32 %v1004_v2, %v1869_v13  ;;  %v1006_v6 = vpop.f32.mrb[14].mxu0 }
 0x148   :  { %v1046_v5 = vadd.f32 %v1045_v3, %v1869_v13  ;;  %v1047_v7 = vpop.f32.mrb[14].mxu1  ;;  %1479 = vtanh.f32 %v1003_v63  ;;  %v1007_v8 = vpop.f32.mrb[15].mxu0 }
 0x149   :  { %v1048_v9 = vpop.f32.mrb[15].mxu1  ;;  %1481 = vtanh.f32 %v1044_v0 }
 0x14a   :  { %1483 = vtanh.f32 %v1005_v4 }
 0x14b   :  { %1485 = vtanh.f32 %v1046_v5 }
 0x152   :  { %v1480_v10 = vpop.eup %1479 }
 0x153   :  { %v1482_v11 = vpop.eup %1481  ;;  %v1054_v12 = vadd.f32 %v1480_v10, %v795_v55 }
 0x154   :  { %v1484_v14 = vpop.eup %1483  ;;  %v1056_v15 = vadd.f32 %v1482_v11, %v797_v57 }
 0x155   :  { %v1486_v16 = vpop.eup %1485  ;;  %v1055_v17 = vadd.f32 %v1484_v14, %v796_v59 }
 0x156   :  { %v1057_v35 = vadd.f32 %v1486_v16, %v798_v60 }
 0x157   :  { %v1291_v18 = vpack.c.bf16 %v1055_v17, %v1054_v12 }
 0x158   :  { %v1292_v13 = vpack.c.bf16 %v1057_v35, %v1056_v15 }
 0x159   :  { %1074 = vst [vmem:[%s1896_s3] sm:$0x77] %v1291_v18 }
 0x15a   :  { %1078 = vst.msk [vmem:[%s1896_s3 + $0x8] sm:$0x77] %vm1077_vm4, %v1292_v13 }

// kernel: lenet5_filocl_forward.6
= control target key start
LH: loop header
LB: loop body
LE: loop exit
PB: predicated region body
PF: predicated region fallthrough
CT: control target
= control target key end

     0   :  { %v723_v0 = vmov 0   ;;  %vm114_vm0 = vcmask 179200   ;;  %vm118_vm1 = vcmask 1042432   ;;  %vm548_vm2 = vcmask 404480   ;;  %s937_s2 = inlined_call_operand.vmem [shape: bf16[4,150,50], index: 2, kind: input, shape index: {}]   ;;  %s938_s0 = inlined_call_operand.vmem [shape: bf16[16,150], index: 0, kind: input, shape index: {}]   ;;  %s939_s1 = inlined_call_operand.vmem [shape: f32[16,1], index: 1, kind: input, shape index: {}]   ;;  %s940_s3 = inlined_call_operand.vmem [shape: bf16[16,50], index: 3, kind: output, shape index: {}]  }
   0x1   :  { %122 = vmatprep.subr.bf16.mxu0 %v723_v0  ;;  %245 = vmatprep.subr.bf16.mxu1 %v723_v0  ;;  %v664_v1 = vld [vmem:[%s937_s2] sm:$0xff]   ;;  %v665_v2 = vld [vmem:[%s937_s2 + $0x4c] sm:$0xff]   ;;  %v667_v4 = vld [vmem:[%s937_s2 + $0x54] sm:$0xff]  }
   0x2   :  { %663 = vset.pattern.permute.xlu0 %v723_v0  ;;  %123 = vmatpush1.bf16.msra.mxu0 %v664_v1  ;;  %v666_v3 = vld [vmem:[%s937_s2 + $0x8] sm:$0xff]   ;;  %v668_v5 = vld [vmem:[%s937_s2 + $0x10] sm:$0xff]   ;;  %v669_v6 = vld [vmem:[%s937_s2 + $0x5c] sm:$0xff]  }
   0x3   :  { %246 = vmatpush1.bf16.msra.mxu1 %v665_v2  ;;  %124 = vmatprep.subr.bf16.mxu0 %v723_v0  ;;  %v670_v7 = vld [vmem:[%s937_s2 + $0x18] sm:$0xff]   ;;  %v671_v8 = vld [vmem:[%s937_s2 + $0x64] sm:$0xff]   ;;  %v673_v10 = vld [vmem:[%s937_s2 + $0x6c] sm:$0xff]  }
   0x4   :  { %247 = vmatprep.subr.bf16.mxu1 %v723_v0  ;;  %v672_v9 = vld [vmem:[%s937_s2 + $0x20] sm:$0xff]   ;;  %v674_v11 = vld [vmem:[%s937_s2 + $0x28] sm:$0xff]   ;;  %v675_v12 = vld [vmem:[%s937_s2 + $0x74] sm:$0xff]  }
   0x5   :  { %v684_v13 = vld [vmem:[%s938_s0 + $0x4] ss:$8 sps:$4 sm:$0xff]   ;;  %v676_v14 = vld [vmem:[%s937_s2 + $0x30] sm:$0xff]   ;;  %v677_v15 = vld [vmem:[%s937_s2 + $0x7c] sm:$0xff]  }
   0x6   :  { %125 = vmatpush1.bf16.msra.mxu0 %v666_v3  ;;  %567 = vmatprep.mubr.msk.bf16.mxu0 %vm114_vm0, %v684_v13  ;;  %v678_v16 = vld [vmem:[%s937_s2 + $0x38] sm:$0xff]   ;;  %v679_v17 = vld [vmem:[%s937_s2 + $0x84] sm:$0xff]   ;;  %v683_v20 = vld [vmem:[%s937_s2 + $0x94] ss:$0 sps:$4 sm:$0x77]  }
   0x7   :  { %248 = vmatpush1.bf16.msra.mxu1 %v667_v4  ;;  %126 = vmatprep.subr.bf16.mxu0 %v723_v0  ;;  %v682_v18 = vld [vmem:[%s937_s2 + $0x48] ss:$0 sps:$4 sm:$0x77]   ;;  %v680_v19 = vld [vmem:[%s937_s2 + $0x40] sm:$0xff]   ;;  %v681_v21 = vld [vmem:[%s937_s2 + $0x8c] sm:$0xff]   ;;  %v243_v23 = vsel %vm118_vm1, %v683_v20, 0 }
   0x8   :  { %249 = vmatprep.subr.bf16.mxu1 %v723_v0  ;;  %597 = vmatprep.mubr.msk.bf16.mxu1 %vm114_vm0, %v684_v13  ;;  %v120_v22 = vsel %vm118_vm1, %v682_v18, 0  ;;  %v835_v24 = vld [vmem:[%s938_s0] ss:$8 sps:$4 sm:$0xff]   ;;  %v687_v25 = vld [vmem:[%s937_s2 + $0x98] sm:$0xff]   ;;  %v690_v30 = vld [vmem:[%s937_s2 + $0xec] sm:$0xff]  }
   0x9   :  { %v688_v26 = vld [vmem:[%s937_s2 + $0xe4] sm:$0xff]   ;;  %v692_v32 = vld [vmem:[%s937_s2 + $0xf4] sm:$0xff]   ;;  %v694_v34 = vld [vmem:[%s937_s2 + $0xfc] sm:$0xff]  }
   0xa   :  { %127 = vmatpush1.bf16.msra.mxu0 %v668_v5  ;;  %v17_v27 = vld [vmem:[%s939_s1] sm:$0xff]  ;;  %v18_v29 = vld [vmem:[%s939_s1 + $0x8] sm:$0xff]  ;;  %v693_v33 = vld [vmem:[%s937_s2 + $0xb0] sm:$0xff]  }
   0xb   :  { %250 = vmatpush1.bf16.msra.mxu1 %v669_v6  ;;  %128 = vmatprep.subr.bf16.mxu0 %v723_v0  ;;  %v689_v28 = vld [vmem:[%s937_s2 + $0xa0] sm:$0xff]   ;;  %v691_v31 = vld [vmem:[%s937_s2 + $0xa8] sm:$0xff]   ;;  %v695_v35 = vld [vmem:[%s937_s2 + $0xb8] sm:$0xff]  }
   0xc   :  { %251 = vmatprep.subr.bf16.mxu1 %v723_v0  ;;  %40 = vperm.xlu0 %663, %v17_v27   ;;  %v696_v36 = vld [vmem:[%s937_s2 + $0x104] sm:$0xff]   ;;  %v698_v38 = vld [vmem:[%s937_s2 + $0x10c] sm:$0xff]   ;;  %v700_v40 = vld [vmem:[%s937_s2 + $0x114] sm:$0xff]  }
   0xd   :  { %v697_v37 = vld [vmem:[%s937_s2 + $0xc0] sm:$0xff]   ;;  %v699_v39 = vld [vmem:[%s937_s2 + $0xc8] sm:$0xff]   ;;  %v701_v41 = vld [vmem:[%s937_s2 + $0xd0] sm:$0xff]  }
   0xe   :  { %129 = vmatpush1.bf16.msra.mxu0 %v670_v7  ;;  %v702_v42 = vld [vmem:[%s937_s2 + $0x11c] sm:$0xff]   ;;  %v704_v44 = vld [vmem:[%s937_s2 + $0x124] sm:$0xff]   ;;  %v706_v46 = vld [vmem:[%s937_s2 + $0x12c] ss:$0 sps:$4 sm:$0x77]  }
   0xf   :  { %252 = vmatpush1.bf16.msra.mxu1 %v671_v8  ;;  %130 = vmatprep.subr.bf16.mxu0 %v723_v0  ;;  %v703_v43 = vld [vmem:[%s937_s2 + $0xd8] sm:$0xff]   ;;  %v705_v45 = vld [vmem:[%s937_s2 + $0xe0] ss:$0 sps:$4 sm:$0x77]   ;;  %v493_v48 = vsel %vm118_vm1, %v706_v46, 0 }
  0x10   :  { %253 = vmatprep.subr.bf16.mxu1 %v723_v0  ;;  %45 = vperm.xlu0 %663, %v18_v29   ;;  %v368_v47 = vsel %vm118_vm1, %v705_v45, 0 }
  0x12   :  { %131 = vmatpush1.bf16.msra.mxu0 %v672_v9 }
  0x13   :  { %254 = vmatpush1.bf16.msra.mxu1 %v673_v10  ;;  %132 = vmatprep.subr.bf16.mxu0 %v723_v0 }
  0x14   :  { %255 = vmatprep.subr.bf16.mxu1 %v723_v0 }
  0x16   :  { %133 = vmatpush1.bf16.msra.mxu0 %v674_v11 }
  0x17   :  { %256 = vmatpush1.bf16.msra.mxu1 %v675_v12  ;;  %134 = vmatprep.subr.bf16.mxu0 %v723_v0 }
  0x18   :  { %257 = vmatprep.subr.bf16.mxu1 %v723_v0 }
  0x1a   :  { %135 = vmatpush1.bf16.msra.mxu0 %v676_v14 }
  0x1b   :  { %258 = vmatpush1.bf16.msra.mxu1 %v677_v15  ;;  %136 = vmatprep.subr.bf16.mxu0 %v723_v0 }
  0x1c   :  { %259 = vmatprep.subr.bf16.mxu1 %v723_v0 }
  0x1e   :  { %137 = vmatpush1.bf16.msra.mxu0 %v678_v16 }
  0x1f   :  { %260 = vmatpush1.bf16.msra.mxu1 %v679_v17  ;;  %138 = vmatprep.subr.bf16.mxu0 %v723_v0 }
  0x20   :  { %261 = vmatprep.subr.bf16.mxu1 %v723_v0 }
  0x22   :  { %139 = vmatpush1.bf16.msra.mxu0 %v680_v19 }
  0x23   :  { %262 = vmatpush1.bf16.msra.mxu1 %v681_v21  ;;  %140 = vmatprep.subr.bf16.mxu0 %v723_v0 }
  0x24   :  { %263 = vmatprep.subr.bf16.mxu1 %v723_v0 }
  0x26   :  { %141 = vmatpush1.bf16.msra.mxu0 %v120_v22 }
  0x27   :  { %264 = vmatpush1.bf16.msra.mxu1 %v243_v23  ;;  %370 = vmatprep.subr.bf16.mxu0 %v723_v0 }
  0x28   :  { %495 = vmatprep.subr.bf16.mxu1 %v723_v0 }
  0x29   :  { %155 = vmatmul.mubr.bf16.vlgmr.msra.gmra.mrb[0].mxu0 %v835_v24 }
  0x2a   :  { %278 = vmatmul.mubr.bf16.vlgmr.msra.gmra.mrb[0].mxu1 %v835_v24  ;;  %371 = vmatpush1.bf16.msra.mxu0 %v687_v25 }
  0x2b   :  { %496 = vmatpush1.bf16.msra.mxu1 %v688_v26  ;;  %372 = vmatprep.subr.bf16.mxu0 %v723_v0 }
  0x2c   :  { %497 = vmatprep.subr.bf16.mxu1 %v723_v0  ;;  %627 = vmatprep.mubr.msk.bf16.mxu0 %vm114_vm0, %v684_v13 }
  0x2d   :  { %657 = vmatprep.mubr.msk.bf16.mxu1 %vm114_vm0, %v684_v13 }
  0x2e   :  { %373 = vmatpush1.bf16.msra.mxu0 %v689_v28 }
  0x2f   :  { %498 = vmatpush1.bf16.msra.mxu1 %v690_v30  ;;  %374 = vmatprep.subr.bf16.mxu0 %v723_v0 }
  0x30   :  { %499 = vmatprep.subr.bf16.mxu1 %v723_v0 }
  0x32   :  { %375 = vmatpush1.bf16.msra.mxu0 %v691_v31 }
  0x33   :  { %500 = vmatpush1.bf16.msra.mxu1 %v692_v32  ;;  %376 = vmatprep.subr.bf16.mxu0 %v723_v0 }
  0x34   :  { %501 = vmatprep.subr.bf16.mxu1 %v723_v0 }
  0x36   :  { %377 = vmatpush1.bf16.msra.mxu0 %v693_v33 }
  0x37   :  { %502 = vmatpush1.bf16.msra.mxu1 %v694_v34  ;;  %378 = vmatprep.subr.bf16.mxu0 %v723_v0 }
  0x38   :  { %503 = vmatprep.subr.bf16.mxu1 %v723_v0 }
  0x3a   :  { %379 = vmatpush1.bf16.msra.mxu0 %v695_v35 }
  0x3b   :  { %504 = vmatpush1.bf16.msra.mxu1 %v696_v36  ;;  %380 = vmatprep.subr.bf16.mxu0 %v723_v0 }
  0x3c   :  { %505 = vmatprep.subr.bf16.mxu1 %v723_v0 }
  0x3e   :  { %381 = vmatpush1.bf16.msra.mxu0 %v697_v37 }
  0x3f   :  { %506 = vmatpush1.bf16.msra.mxu1 %v698_v38  ;;  %382 = vmatprep.subr.bf16.mxu0 %v723_v0 }
  0x40   :  { %507 = vmatprep.subr.bf16.mxu1 %v723_v0 }
  0x42   :  { %383 = vmatpush1.bf16.msra.mxu0 %v699_v39 }
  0x43   :  { %508 = vmatpush1.bf16.msra.mxu1 %v700_v40  ;;  %384 = vmatprep.subr.bf16.mxu0 %v723_v0 }
  0x44   :  { %509 = vmatprep.subr.bf16.mxu1 %v723_v0 }
  0x46   :  { %385 = vmatpush1.bf16.msra.mxu0 %v701_v41 }
  0x47   :  { %510 = vmatpush1.bf16.msra.mxu1 %v702_v42  ;;  %386 = vmatprep.subr.bf16.mxu0 %v723_v0 }
  0x48   :  { %511 = vmatprep.subr.bf16.mxu1 %v723_v0 }
  0x4a   :  { %387 = vmatpush1.bf16.msra.mxu0 %v703_v43 }
  0x4b   :  { %512 = vmatpush1.bf16.msra.mxu1 %v704_v44  ;;  %388 = vmatprep.subr.bf16.mxu0 %v723_v0 }
  0x4c   :  { %513 = vmatprep.subr.bf16.mxu1 %v723_v0 }
  0x4e   :  { %389 = vmatpush1.bf16.msra.mxu0 %v368_v47 }
  0x4f   :  { %514 = vmatpush1.bf16.msra.mxu1 %v493_v48 }
  0x51   :  { %403 = vmatmul.mubr.bf16.vlgmr.msra.gmra.mrb[4].mxu0 %v835_v24 }
  0x52   :  { %528 = vmatmul.mubr.bf16.vlgmr.msra.gmra.mrb[4].mxu1 %v835_v24 }
  0x8b   :  { %v41_v49 = vpop.permute.xlu0 %40 }
  0x8f   :  { %v46_v51 = vpop.permute.xlu0 %45 }
  0xfc   :  { %v156_v50 = vpop.f32.mrb[0].mxu0 }
  0xfd   :  { %v157_v52 = vadd.f32 %v156_v50, %v41_v49  ;;  %v279_v53 = vpop.f32.mrb[0].mxu1  ;;  %v158_v54 = vpop.f32.mrb[1].mxu0 }
  0xfe   :  { %v280_v55 = vadd.f32 %v279_v53, %v41_v49  ;;  %v281_v56 = vpop.f32.mrb[1].mxu1  ;;  %v159_v57 = vpop.f32.mrb[2].mxu0 }
  0xff   :  { %707 = vtanh.f32 %v157_v52  ;;  %v160_v58 = vadd.f32 %v159_v57, %v46_v51  ;;  %v282_v59 = vpop.f32.mrb[2].mxu1  ;;  %v161_v60 = vpop.f32.mrb[3].mxu0 }
 0x100   :  { %709 = vtanh.f32 %v280_v55  ;;  %v283_v61 = vadd.f32 %v282_v59, %v46_v51  ;;  %v284_v62 = vpop.f32.mrb[3].mxu1 }
 0x101   :  { %711 = vtanh.f32 %v160_v58 }
 0x102   :  { %713 = vtanh.f32 %v283_v61 }
 0x109   :  { %v708_v63 = vpop.eup %707 }
 0x10a   :  { %v710_v0 = vpop.eup %709 }
 0x10b   :  { %v712_v1 = vpop.eup %711  ;;  %v288_v2 = vadd.f32 %v710_v0, %v708_v63 }
 0x10c   :  { %v714_v3 = vpop.eup %713 }
 0x10d   :  { %v289_v4 = vadd.f32 %v714_v3, %v712_v1 }
 0x124   :  { %v404_v5 = vpop.f32.mrb[4].mxu0 }
 0x125   :  { %v405_v6 = vadd.f32 %v404_v5, %v41_v49  ;;  %v529_v7 = vpop.f32.mrb[4].mxu1  ;;  %v406_v8 = vpop.f32.mrb[5].mxu0 }
 0x126   :  { %v530_v9 = vadd.f32 %v529_v7, %v41_v49  ;;  %v531_v10 = vpop.f32.mrb[5].mxu1  ;;  %v407_v11 = vpop.f32.mrb[6].mxu0 }
 0x127   :  { %715 = vtanh.f32 %v405_v6  ;;  %v408_v12 = vadd.f32 %v407_v11, %v46_v51  ;;  %v532_v13 = vpop.f32.mrb[6].mxu1  ;;  %v409_v14 = vpop.f32.mrb[7].mxu0 }
 0x128   :  { %717 = vtanh.f32 %v530_v9  ;;  %v533_v15 = vadd.f32 %v532_v13, %v46_v51  ;;  %v534_v16 = vpop.f32.mrb[7].mxu1 }
 0x129   :  { %719 = vtanh.f32 %v408_v12 }
 0x12a   :  { %721 = vtanh.f32 %v533_v15 }
 0x131   :  { %v716_v17 = vpop.eup %715 }
 0x132   :  { %v718_v18 = vpop.eup %717  ;;  %v413_v19 = vadd.f32 %v716_v17, %v288_v2 }
 0x133   :  { %v720_v20 = vpop.eup %719 }
 0x134   :  { %v538_v21 = vadd.f32 %v718_v18, %v413_v19  ;;  %v414_v22 = vadd.f32 %v720_v20, %v289_v4  ;;  %v722_v23 = vpop.eup %721 }
 0x136   :  { %v660_v24 = vpack.c.bf16 %v538_v21, %v538_v21  ;;  %v539_v25 = vadd.f32 %v722_v23, %v414_v22 }
 0x138   :  { %549 = vst.msk [vmem:[%s940_s3] sm:$0xf] %vm548_vm2, %v660_v24  ;;  %v661_v26 = vpack.c.bf16 %v539_v25, %v539_v25 }
 0x13a   :  { %550 = vst.msk [vmem:[%s940_s3 + $0x4] sm:$0xf] %vm548_vm2, %v661_v26 }

// kernel: lenet5_filocl_forward.7
= control target key start
LH: loop header
LB: loop body
LE: loop exit
PB: predicated region body
PF: predicated region fallthrough
CT: control target
= control target key end

     0   :  { %v1378_v0 = vmov 0   ;;  %vm493_vm0 = vcmask 130048   ;;  %vm838_vm1 = vcmask 982016   ;;  %vm857_vm2 = vcmask 1043456   ;;  %s1729_s0 = inlined_call_operand.vmem [shape: bf16[400,2], index: 0, kind: input, shape index: {}]   ;;  %s1730_s1 = inlined_call_operand.vmem [shape: bf16[120,400], index: 1, kind: input, shape index: {}]   ;;  %s1731_s2 = inlined_call_operand.vmem [shape: f32[120,1], index: 2, kind: input, shape index: {}]   ;;  %s1732_s4 = inlined_call_operand.vmem [shape: f32[84,1], index: 4, kind: input, shape index: {}]   ;;  %s1733_s6 = inlined_call_operand.vmem [shape: f32[10,1], index: 6, kind: input, shape index: {}]   ;;  %s1734_s3 = inlined_call_operand.vmem [shape: bf16[84,120], index: 3, kind: input, shape index: {}]   ;;  %s1735_s5 = inlined_call_operand.vmem [shape: bf16[10,84], index: 5, kind: input, shape index: {}]   ;;  %s1736_s7 = inlined_call_operand.vmem [shape: f32[10,2], index: 7, kind: output, shape index: {}]  }
   0x1   :  { %614 = vmatprep.subr.bf16.mxu1 %v1378_v0  ;;  %v1248_v1 = vld [vmem:[%s1729_s0 + $0x40] sm:$0xff]   ;;  %1246 = vset.pattern.permute.xlu0 %v1378_v0  ;;  %v1251_v4 = vld [vmem:[%s1729_s0 + $0x48] sm:$0xff]   ;;  %v1254_v7 = vld [vmem:[%s1729_s0 + $0x50] sm:$0xff]   ;;  %vm1380_vm3 = vmmov 0   ;;  %vm981_vm4 = vcmask 1041408   ;;  %vm977_vm5 = vcmask 687104  }
   0x2   :  { %v1249_v2 = vld [vmem:[%s1729_s0 + $0x80] sm:$0xff]   ;;  %1247 = vset.pattern.permute.xlu1 %v1378_v0  ;;  %1113 = vmatprep.subr.bf16.mxu0 %v1248_v1  ;;  %v1252_v5 = vld [vmem:[%s1729_s0 + $0x88] sm:$0xff]   ;;  %v1255_v8 = vld [vmem:[%s1729_s0 + $0x90] sm:$0xff]   ;;  %vm1026_vm6 = vcmask 15360   ;;  %vm1028_vm7 = vcmask 9216  }
   0x3   :  { %v1250_v3 = vld [vmem:[%s1729_s0] sm:$0xff]   ;;  %615 = vmatpush1.bf16.msra.mxu1 %v1249_v2  ;;  %v1253_v6 = vld [vmem:[%s1729_s0 + $0x8] sm:$0xff]   ;;  %v1256_v9 = vld [vmem:[%s1729_s0 + $0x10] sm:$0xff]  }
   0x4   :  { %1114 = vmatpush3.bf16.msra.mxu0 %v1250_v3  ;;  %616 = vmatprep.subr.bf16.mxu1 %v1378_v0  ;;  %v1257_v10 = vld [vmem:[%s1729_s0 + $0x58] sm:$0xff]   ;;  %v1260_v13 = vld [vmem:[%s1729_s0 + $0x60] sm:$0xff]   ;;  %v1263_v16 = vld [vmem:[%s1729_s0 + $0x68] sm:$0xff]  }
   0x5   :  { %1115 = vmatprep.subr.bf16.mxu0 %v1251_v4  ;;  %v1258_v11 = vld [vmem:[%s1729_s0 + $0x98] sm:$0xff]   ;;  %v1261_v14 = vld [vmem:[%s1729_s0 + $0xa0] sm:$0xff]   ;;  %v1264_v17 = vld [vmem:[%s1729_s0 + $0xa8] sm:$0xff]  }
   0x6   :  { %v1259_v12 = vld [vmem:[%s1729_s0 + $0x18] sm:$0xff]   ;;  %v1262_v15 = vld [vmem:[%s1729_s0 + $0x20] sm:$0xff]   ;;  %v1265_v18 = vld [vmem:[%s1729_s0 + $0x28] sm:$0xff]  }
   0x7   :  { %617 = vmatpush1.bf16.msra.mxu1 %v1252_v5  ;;  %v1266_v19 = vld [vmem:[%s1729_s0 + $0x70] sm:$0xff]   ;;  %v1269_v22 = vld [vmem:[%s1729_s0 + $0x78] sm:$0xff]   ;;  %v1275_v28 = vld [vmem:[%s1729_s0 + $0xc0] sm:$0xff]  }
   0x8   :  { %1116 = vmatpush3.bf16.msra.mxu0 %v1253_v6  ;;  %618 = vmatprep.subr.bf16.mxu1 %v1378_v0  ;;  %v1267_v20 = vld [vmem:[%s1729_s0 + $0xb0] sm:$0xff]   ;;  %v1270_v24 = vld [vmem:[%s1729_s0 + $0xb8] sm:$0xff]   ;;  %v107_v36 = vld [vmem:[%s1731_s2] sm:$0xff] }
   0x9   :  { %1117 = vmatprep.subr.bf16.mxu0 %v1254_v7  ;;  %v1268_v21 = vld [vmem:[%s1729_s0 + $0x30] sm:$0xff]   ;;  %v1278_v25 = vld [vmem:[%s1730_s1 + $0xc] ss:$16 sps:$4 sm:$0xff]   ;;  %v1276_v30 = vld [vmem:[%s1730_s1 + $0x8] ss:$16 sps:$4 sm:$0xff]   ;;  %124 = vperm.xlu0 %1246, %v107_v36  }
   0xa   :  { %v1274_v23 = vld [vmem:[%s1730_s1 + $0x4] ss:$16 sps:$4 sm:$0xff]   ;;  %v1271_v26 = vld [vmem:[%s1729_s0 + $0x38] sm:$0xff]   ;;  %1091 = vmatprep.mubr.msk.bf16.mxu1 %vm493_vm0, %v1278_v25  ;;  %v1272_v27 = vld [vmem:[%s1730_s1] ss:$16 sps:$4 sm:$0xff]  }
   0xb   :  { %619 = vmatpush1.bf16.msra.mxu1 %v1255_v8  ;;  %550 = vmatprep.mubr.bf16.mxu0 %v1274_v23  ;;  %v1279_v29 = vld [vmem:[%s1730_s1 + $0x24] ss:$16 sps:$4 sm:$0xff]   ;;  %v1282_v31 = vld [vmem:[%s1730_s1 + $0x2c] ss:$16 sps:$4 sm:$0xff]   ;;  %v1281_v32 = vld [vmem:[%s1730_s1 + $0x20] ss:$16 sps:$4 sm:$0xff]  }
   0xc   :  { %1118 = vmatpush3.bf16.msra.mxu0 %v1256_v9  ;;  %620 = vmatprep.subr.bf16.mxu1 %v1378_v0  ;;  %v1285_v33 = vld [vmem:[%s1730_s1 + $0x44] ss:$16 sps:$4 sm:$0xff]   ;;  %v1284_v34 = vld [vmem:[%s1730_s1 + $0x28] ss:$16 sps:$4 sm:$0xff]   ;;  %v1288_v35 = vld [vmem:[%s1730_s1 + $0x4c] ss:$16 sps:$4 sm:$0xff]  }
   0xd   :  { %1119 = vmatprep.subr.bf16.mxu0 %v1257_v10  ;;  %v109_v37 = vld [vmem:[%s1731_s2 + $0x10] sm:$0xff]  ;;  %v108_v38 = vld [vmem:[%s1731_s2 + $0x8] sm:$0xff]  ;;  %v110_v39 = vld [vmem:[%s1731_s2 + $0x18] sm:$0xff] }
   0xe   :  { %134 = vperm.xlu1 %1247, %v109_v37   ;;  %v1287_v40 = vld [vmem:[%s1730_s1 + $0x40] ss:$16 sps:$4 sm:$0xff]   ;;  %v1291_v41 = vld [vmem:[%s1730_s1 + $0x64] ss:$16 sps:$4 sm:$0xff]   ;;  %129 = vperm.xlu0 %1246, %v108_v38   ;;  %v1290_v42 = vld [vmem:[%s1730_s1 + $0x48] ss:$16 sps:$4 sm:$0xff]  }
   0xf   :  { %621 = vmatpush1.bf16.msra.mxu1 %v1258_v11  ;;  %v111_v43 = vld [vmem:[%s1731_s2 + $0x20] sm:$0xff]  ;;  %v112_v44 = vld [vmem:[%s1731_s2 + $0x28] sm:$0xff]  ;;  %v113_v46 = vld [vmem:[%s1731_s2 + $0x30] sm:$0xff] }
  0x10   :  { %1120 = vmatpush3.bf16.msra.mxu0 %v1259_v12  ;;  %622 = vmatprep.subr.bf16.mxu1 %v1378_v0  ;;  %v1294_v45 = vld [vmem:[%s1730_s1 + $0x6c] ss:$16 sps:$4 sm:$0xff]   ;;  %v1293_v48 = vld [vmem:[%s1730_s1 + $0x60] ss:$16 sps:$4 sm:$0xff]   ;;  %v1297_v49 = vld [vmem:[%s1730_s1 + $0x84] ss:$16 sps:$4 sm:$0xff]  }
  0x11   :  { %1121 = vmatprep.subr.bf16.mxu0 %v1260_v13  ;;  %v114_v47 = vld [vmem:[%s1731_s2 + $0x38] sm:$0xff]  ;;  %v115_v51 = vld [vmem:[%s1731_s2 + $0x40] sm:$0xff]  ;;  %v116_v52 = vld [vmem:[%s1731_s2 + $0x48] sm:$0xff] }
  0x12   :  { %139 = vperm.xlu1 %1247, %v110_v39   ;;  %144 = vperm.xlu0 %1246, %v111_v43   ;;  %v1296_v50 = vld [vmem:[%s1730_s1 + $0x68] ss:$16 sps:$4 sm:$0xff]   ;;  %v1300_v53 = vld [vmem:[%s1730_s1 + $0x8c] ss:$16 sps:$4 sm:$0xff]   ;;  %v117_v54 = vld [vmem:[%s1731_s2 + $0x50] sm:$0xff] }
  0x13   :  { %623 = vmatpush1.bf16.msra.mxu1 %v1261_v14  ;;  %v118_v55 = vld [vmem:[%s1731_s2 + $0x58] sm:$0xff]  ;;  %v1299_v56 = vld [vmem:[%s1730_s1 + $0x80] ss:$16 sps:$4 sm:$0xff]   ;;  %v1303_v57 = vld [vmem:[%s1730_s1 + $0xa4] ss:$16 sps:$4 sm:$0xff]  }
  0x14   :  { %1122 = vmatpush3.bf16.msra.mxu0 %v1262_v15  ;;  %624 = vmatprep.subr.bf16.mxu1 %v1378_v0  ;;  %v1302_v58 = vld [vmem:[%s1730_s1 + $0x88] ss:$16 sps:$4 sm:$0xff]   ;;  %v119_v59 = vld [vmem:[%s1731_s2 + $0x60] sm:$0xff]  ;;  %v1306_v61 = vld [vmem:[%s1730_s1 + $0xac] ss:$16 sps:$4 sm:$0xff]  }
  0x15   :  { %1123 = vmatprep.subr.bf16.mxu0 %v1263_v16  ;;  %v120_v60 = vld [vmem:[%s1731_s2 + $0x68] sm:$0xff]  ;;  %v121_v62 = vld [vmem:[%s1731_s2 + $0x70] sm:$0xff]  ;;  %v744_v63 = vld [vmem:[%s1732_s4] sm:$0xff] }
  0x16   :  { %149 = vperm.xlu1 %1247, %v112_v44   ;;  %154 = vperm.xlu0 %1246, %v113_v46   ;;  %v1309_v1 = vld [vmem:[%s1730_s1 + $0xc4] ss:$16 sps:$4 sm:$0xff]   ;;  %v1308_v2 = vld [vmem:[%s1730_s1 + $0xa8] ss:$16 sps:$4 sm:$0xff]   ;;  %v1312_v5 = vld [vmem:[%s1730_s1 + $0xcc] ss:$16 sps:$4 sm:$0xff]  }
  0x17   :  { %625 = vmatpush1.bf16.msra.mxu1 %v1264_v17  ;;  %v745_v3 = vld [vmem:[%s1732_s4 + $0x8] sm:$0xff]  ;;  %v746_v4 = vld [vmem:[%s1732_s4 + $0x10] sm:$0xff]  ;;  %v55_v6 = vld [vmem:[%s1730_s1 + $0xe0] sm:$0xff] }
  0x18   :  { %1124 = vmatpush3.bf16.msra.mxu0 %v1265_v18  ;;  %626 = vmatprep.subr.bf16.mxu1 %v1378_v0  ;;  %v747_v7 = vld [vmem:[%s1732_s4 + $0x18] sm:$0xff]  ;;  %v748_v8 = vld [vmem:[%s1732_s4 + $0x20] sm:$0xff]  ;;  %v1063_v10 = vcombine.high %v55_v6, %v55_v6  ;;  %v56_v11 = vld [vmem:[%s1730_s1 + $0xe8] sm:$0xff]  ;;  %v1062_v18 = vcombine.low %v55_v6, %v55_v6 }
  0x19   :  { %1125 = vmatprep.subr.bf16.mxu0 %v1266_v19  ;;  %v1311_v9 = vld [vmem:[%s1730_s1 + $0xc0] ss:$16 sps:$4 sm:$0xff]   ;;  %v1314_v12 = vld [vmem:[%s1730_s1 + $0xc8] ss:$16 sps:$4 sm:$0xff]   ;;  %v1065_v15 = vcombine.high %v56_v11, %v56_v11  ;;  %v1064_v19 = vcombine.low %v56_v11, %v56_v11 }
  0x1a   :  { %159 = vperm.xlu1 %1247, %v114_v47   ;;  %164 = vperm.xlu0 %1246, %v115_v51   ;;  %v749_v13 = vld [vmem:[%s1732_s4 + $0x28] sm:$0xff]  ;;  %v750_v14 = vld [vmem:[%s1732_s4 + $0x30] sm:$0xff]  ;;  %v751_v16 = vld [vmem:[%s1732_s4 + $0x38] sm:$0xff] }
  0x1b   :  { %627 = vmatpush1.bf16.msra.mxu1 %v1267_v20  ;;  %v752_v17 = vld [vmem:[%s1732_s4 + $0x40] sm:$0xff]  ;;  %v753_v20 = vld [vmem:[%s1732_s4 + $0x48] sm:$0xff] }
  0x1c   :  { %1126 = vmatpush3.bf16.msra.mxu0 %v1268_v21  ;;  %628 = vmatprep.subr.bf16.mxu1 %v1378_v0  ;;  %v754_v21 = vld [vmem:[%s1732_s4 + $0x50] sm:$0xf]  ;;  %v961_v23 = vld [vmem:[%s1733_s6 + $0x8] sm:$0x3] }
  0x1d   :  { %1127 = vmatprep.subr.bf16.mxu0 %v1269_v22  ;;  %v960_v22 = vld [vmem:[%s1733_s6] sm:$0xff] }
  0x1e   :  { %169 = vperm.xlu1 %1247, %v116_v52   ;;  %174 = vperm.xlu0 %1246, %v117_v54  }
  0x1f   :  { %629 = vmatpush1.bf16.msra.mxu1 %v1270_v24  ;;  %v1319_v24 = vld [vmem:[%s1734_s3] sm:$0xff]  }
  0x20   :  { %1128 = vmatpush3.bf16.msra.mxu0 %v1271_v26  ;;  %630 = vmatprep.subr.bf16.mxu1 %v1378_v0  ;;  %v1305_v0 = vld [vmem:[%s1730_s1 + $0xa0] ss:$16 sps:$4 sm:$0xff]  }
  0x22   :  { %179 = vperm.xlu1 %1247, %v118_v55   ;;  %184 = vperm.xlu0 %1246, %v119_v59  }
  0x23   :  { %551 = vmatmul.mubr.bf16.vlgmr.msra.gmra.mrb[0].mxu0 %v1272_v27  ;;  %631 = vmatpush1.bf16.msra.mxu1 %v1275_v28 }
  0x24   :  { %558 = vmatprep.mubr.bf16.mxu0 %v1279_v29 }
  0x26   :  { %647 = vmatmul.mubr.bf16.vlgmr.msra.gmra.mrb[0].mxu1 %v1276_v30  ;;  %189 = vperm.xlu1 %1247, %v120_v60  }
  0x27   :  { %1092 = vmatprep.mubr.msk.bf16.mxu1 %vm493_vm0, %v1282_v31  ;;  %194 = vperm.xlu0 %1246, %v121_v62  }
  0x2a   :  { %757 = vperm.xlu1 %1247, %v744_v63  }
  0x2b   :  { %559 = vmatmul.mubr.bf16.gmra.mrb[4].mxu0 %v1281_v32  ;;  %762 = vperm.xlu0 %1246, %v745_v3  }
  0x2c   :  { %566 = vmatprep.mubr.bf16.mxu0 %v1285_v33 }
  0x2e   :  { %655 = vmatmul.mubr.bf16.gmra.mrb[4].mxu1 %v1284_v34  ;;  %767 = vperm.xlu1 %1247, %v746_v4  }
  0x2f   :  { %1093 = vmatprep.mubr.msk.bf16.mxu1 %vm493_vm0, %v1288_v35  ;;  %772 = vperm.xlu0 %1246, %v747_v7  }
  0x32   :  { %777 = vperm.xlu1 %1247, %v748_v8  }
  0x33   :  { %567 = vmatmul.mubr.bf16.gmra.mrb[8].mxu0 %v1287_v40  ;;  %782 = vperm.xlu0 %1246, %v749_v13  }
  0x34   :  { %574 = vmatprep.mubr.bf16.mxu0 %v1291_v41 }
  0x36   :  { %663 = vmatmul.mubr.bf16.gmra.mrb[8].mxu1 %v1290_v42  ;;  %787 = vperm.xlu1 %1247, %v750_v14  }
  0x37   :  { %1094 = vmatprep.mubr.msk.bf16.mxu1 %vm493_vm0, %v1294_v45  ;;  %792 = vperm.xlu0 %1246, %v751_v16  }
  0x3a   :  { %797 = vperm.xlu1 %1247, %v752_v17  }
  0x3b   :  { %575 = vmatmul.mubr.bf16.gmra.mrb[12].mxu0 %v1293_v48  ;;  %802 = vperm.xlu0 %1246, %v753_v20  }
  0x3c   :  { %582 = vmatprep.mubr.bf16.mxu0 %v1297_v49 }
  0x3e   :  { %671 = vmatmul.mubr.bf16.gmra.mrb[12].mxu1 %v1296_v50  ;;  %807 = vperm.xlu1 %1247, %v754_v21  }
  0x3f   :  { %1095 = vmatprep.mubr.msk.bf16.mxu1 %vm493_vm0, %v1300_v53  ;;  %964 = vperm.xlu0 %1246, %v960_v22  }
  0x42   :  { %969 = vperm.xlu1 %1247, %v961_v23  }
  0x43   :  { %583 = vmatmul.mubr.bf16.gmra.mrb[16].mxu0 %v1299_v56 }
  0x44   :  { %590 = vmatprep.mubr.bf16.mxu0 %v1303_v57 }
  0x46   :  { %679 = vmatmul.mubr.bf16.gmra.mrb[16].mxu1 %v1302_v58 }
  0x47   :  { %1096 = vmatprep.mubr.msk.bf16.mxu1 %vm493_vm0, %v1306_v61 }
  0x4b   :  { %591 = vmatmul.mubr.bf16.gmra.mrb[20].mxu0 %v1305_v0 }
  0x4c   :  { %598 = vmatprep.mubr.bf16.mxu0 %v1309_v1 }
  0x4e   :  { %687 = vmatmul.mubr.bf16.gmra.mrb[20].mxu1 %v1308_v2 }
  0x4f   :  { %1097 = vmatprep.mubr.msk.bf16.mxu1 %vm493_vm0, %v1312_v5 }
  0x53   :  { %599 = vmatmul.mubr.bf16.gmra.mrb[24].mxu0 %v1311_v9 }
  0x54   :  { %606 = vmatprep.mubr.bf16.mxu0 %v1063_v10 }
  0x56   :  { %695 = vmatmul.mubr.bf16.gmra.mrb[24].mxu1 %v1314_v12 }
  0x57   :  { %1098 = vmatprep.mubr.msk.bf16.mxu1 %vm493_vm0, %v1065_v15 }
  0x5b   :  { %607 = vmatmul.mubr.bf16.gmra.mrb[28].mxu0 %v1062_v18 }
  0x5c   :  { %1214 = vmatprep.mubr.msk.bf16.mxu0 %vm838_vm1, %v1319_v24 }
  0x5e   :  { %703 = vmatmul.mubr.bf16.gmra.mrb[28].mxu1 %v1064_v19 }
  0x88   :  { %v125_v25 = vpop.permute.xlu0 %124 }
  0x8d   :  { %v130_v35 = vpop.permute.xlu0 %129  ;;  %v135_v40 = vpop.permute.xlu1 %134 }
  0x91   :  { %v140_v51 = vpop.permute.xlu1 %139  ;;  %v145_v59 = vpop.permute.xlu0 %144 }
  0x95   :  { %v150_v5 = vpop.permute.xlu1 %149  ;;  %v155_v14 = vpop.permute.xlu0 %154 }
  0x99   :  { %v160_v24 = vpop.permute.xlu1 %159 }
  0xf6   :  { %v1129_v26 = vpop.f32.mrb[0].mxu0 }
  0xf7   :  { %v1130_v27 = vpop.f32.mrb[1].mxu0 }
  0xf8   :  { %v1131_v28 = vadd.f32 %v1130_v27, %v1129_v26  ;;  %v1132_v29 = vpop.f32.mrb[2].mxu0 }
  0xf9   :  { %v1133_v30 = vpop.f32.mrb[3].mxu0  ;;  %v648_v31 = vpop.f32.mrb[0].mxu1 }
  0xfa   :  { %v1134_v32 = vadd.f32 %v1133_v30, %v1132_v29  ;;  %v553_v33 = vadd.f32 %v1131_v28, %v125_v25  ;;  %v650_v34 = vpop.f32.mrb[1].mxu1 }
  0xfb   :  { %v651_v36 = vpop.f32.mrb[2].mxu1 }
  0xfc   :  { %v649_v37 = vadd.f32 %v648_v31, %v553_v33  ;;  %v556_v38 = vadd.f32 %v1134_v32, %v130_v35  ;;  %v653_v39 = vpop.f32.mrb[3].mxu1  ;;  %v165_v33 = vpop.permute.xlu0 %164 }
  0xfe   :  { %v652_v41 = vadd.f32 %v651_v36, %v556_v38  ;;  %v1135_v42 = vpop.f32.mrb[4].mxu0  ;;  %1326 = vtanh.f32 %v649_v37 }
  0xff   :  { %v1136_v43 = vpop.f32.mrb[5].mxu0 }
 0x100   :  { %1328 = vtanh.f32 %v652_v41  ;;  %v1137_v44 = vadd.f32 %v1136_v43, %v1135_v42  ;;  %v1138_v45 = vpop.f32.mrb[6].mxu0  ;;  %v170_v43 = vpop.permute.xlu1 %169 }
 0x101   :  { %v1139_v46 = vpop.f32.mrb[7].mxu0  ;;  %v656_v47 = vpop.f32.mrb[4].mxu1 }
 0x102   :  { %v1140_v48 = vadd.f32 %v1139_v46, %v1138_v45  ;;  %v561_v49 = vadd.f32 %v1137_v44, %v135_v40  ;;  %v658_v50 = vpop.f32.mrb[5].mxu1 }
 0x103   :  { %v659_v52 = vpop.f32.mrb[6].mxu1 }
 0x104   :  { %v657_v53 = vadd.f32 %v656_v47, %v561_v49  ;;  %v564_v54 = vadd.f32 %v1140_v48, %v140_v51  ;;  %v661_v55 = vpop.f32.mrb[7].mxu1 }
 0x106   :  { %v660_v56 = vadd.f32 %v659_v52, %v564_v54  ;;  %v1141_v57 = vpop.f32.mrb[8].mxu0  ;;  %1330 = vtanh.f32 %v657_v53  ;;  %v175_v52 = vpop.permute.xlu0 %174 }
 0x107   :  { %v1142_v58 = vpop.f32.mrb[9].mxu0 }
 0x108   :  { %1332 = vtanh.f32 %v660_v56  ;;  %v1143_v60 = vadd.f32 %v1142_v58, %v1141_v57  ;;  %v1144_v61 = vpop.f32.mrb[10].mxu0  ;;  %v1327_v62 = vpop.eup %1326 }
 0x109   :  { %v1145_v63 = vpop.f32.mrb[11].mxu0  ;;  %v664_v0 = vpop.f32.mrb[8].mxu1 }
 0x10a   :  { %v1329_v1 = vpop.eup %1328  ;;  %v1146_v2 = vadd.f32 %v1145_v63, %v1144_v61  ;;  %v569_v3 = vadd.f32 %v1143_v60, %v145_v59  ;;  %v666_v4 = vpop.f32.mrb[9].mxu1 }
 0x10b   :  { %v667_v6 = vpop.f32.mrb[10].mxu1  ;;  %v736_v7 = vpack.c.bf16 %v1329_v1, %v1327_v62  ;;  %v180_v62 = vpop.permute.xlu1 %179 }
 0x10c   :  { %v665_v8 = vadd.f32 %v664_v0, %v569_v3  ;;  %v572_v9 = vadd.f32 %v1146_v2, %v150_v5  ;;  %v669_v10 = vpop.f32.mrb[11].mxu1 }
 0x10d   :  { %1198 = vmatprep.subr.bf16.mxu0 %v736_v7 }
 0x10e   :  { %v668_v11 = vadd.f32 %v667_v6, %v572_v9  ;;  %v1147_v12 = vpop.f32.mrb[12].mxu0  ;;  %1199 = vmatpush3.bf16.msra.mxu0 %v736_v7  ;;  %1334 = vtanh.f32 %v665_v8  ;;  %v185_v7 = vpop.permute.xlu0 %184 }
 0x10f   :  { %v1148_v13 = vpop.f32.mrb[13].mxu0 }
 0x110   :  { %1336 = vtanh.f32 %v668_v11  ;;  %v1149_v15 = vadd.f32 %v1148_v13, %v1147_v12  ;;  %v1150_v16 = vpop.f32.mrb[14].mxu0  ;;  %v1331_v17 = vpop.eup %1330 }
 0x111   :  { %v1151_v18 = vpop.f32.mrb[15].mxu0  ;;  %v672_v19 = vpop.f32.mrb[12].mxu1 }
 0x112   :  { %v1333_v20 = vpop.eup %1332  ;;  %v1152_v21 = vadd.f32 %v1151_v18, %v1150_v16  ;;  %v577_v22 = vadd.f32 %v1149_v15, %v155_v14  ;;  %v674_v23 = vpop.f32.mrb[13].mxu1 }
 0x113   :  { %v675_v25 = vpop.f32.mrb[14].mxu1  ;;  %v737_v26 = vpack.c.bf16 %v1333_v20, %v1331_v17  ;;  %v190_v17 = vpop.permute.xlu1 %189 }
 0x114   :  { %v673_v27 = vadd.f32 %v672_v19, %v577_v22  ;;  %v580_v28 = vadd.f32 %v1152_v21, %v160_v24  ;;  %v677_v29 = vpop.f32.mrb[15].mxu1 }
 0x115   :  { %1200 = vmatprep.subr.bf16.mxu0 %v737_v26 }
 0x116   :  { %v676_v30 = vadd.f32 %v675_v25, %v580_v28  ;;  %v1153_v31 = vpop.f32.mrb[16].mxu0  ;;  %1201 = vmatpush3.bf16.msra.mxu0 %v737_v26  ;;  %1338 = vtanh.f32 %v673_v27  ;;  %v195_v26 = vpop.permute.xlu0 %194 }
 0x117   :  { %v1154_v32 = vpop.f32.mrb[17].mxu0 }
 0x118   :  { %1340 = vtanh.f32 %v676_v30  ;;  %v1155_v34 = vadd.f32 %v1154_v32, %v1153_v31  ;;  %v1156_v35 = vpop.f32.mrb[18].mxu0  ;;  %v1335_v36 = vpop.eup %1334 }
 0x119   :  { %v1157_v37 = vpop.f32.mrb[19].mxu0  ;;  %v680_v38 = vpop.f32.mrb[16].mxu1 }
 0x11a   :  { %v1337_v39 = vpop.eup %1336  ;;  %v1158_v40 = vadd.f32 %v1157_v37, %v1156_v35  ;;  %v585_v41 = vadd.f32 %v1155_v34, %v165_v33  ;;  %v682_v42 = vpop.f32.mrb[17].mxu1 }
 0x11b   :  { %v683_v44 = vpop.f32.mrb[18].mxu1  ;;  %v738_v45 = vpack.c.bf16 %v1337_v39, %v1335_v36 }
 0x11c   :  { %v681_v46 = vadd.f32 %v680_v38, %v585_v41  ;;  %v588_v47 = vadd.f32 %v1158_v40, %v170_v43  ;;  %v685_v48 = vpop.f32.mrb[19].mxu1 }
 0x11d   :  { %1202 = vmatprep.subr.bf16.mxu0 %v738_v45  ;;  %v1323_v48 = vld [vmem:[%s1734_s3 + $0x20] sm:$0xff]  }
 0x11e   :  { %v684_v49 = vadd.f32 %v683_v44, %v588_v47  ;;  %v1159_v50 = vpop.f32.mrb[20].mxu0  ;;  %1203 = vmatpush3.bf16.msra.mxu0 %v738_v45  ;;  %1342 = vtanh.f32 %v681_v46  ;;  %v1320_v45 = vld [vmem:[%s1734_s3 + $0x8] sm:$0xff]   ;;  %v1321_v46 = vld [vmem:[%s1734_s3 + $0x10] sm:$0xff]   ;;  %v1322_v47 = vld [vmem:[%s1734_s3 + $0x18] sm:$0xff]  }
 0x11f   :  { %v1160_v51 = vpop.f32.mrb[21].mxu0 }
 0x120   :  { %1344 = vtanh.f32 %v684_v49  ;;  %v1161_v53 = vadd.f32 %v1160_v51, %v1159_v50  ;;  %v1162_v54 = vpop.f32.mrb[22].mxu0  ;;  %v1339_v55 = vpop.eup %1338  ;;  %v1324_v49 = vld [vmem:[%s1734_s3 + $0x28] ss:$0 sps:$4 sm:$0x33]   ;;  %v1379_v50 = vmov 0.0  }
 0x121   :  { %v1163_v56 = vpop.f32.mrb[23].mxu0  ;;  %v688_v57 = vpop.f32.mrb[20].mxu1  ;;  %1226 = vmatprep.subr.bf16.mxu1 %v1379_v50  ;;  %1238 = vmatprep.mubr.msk.bf16.mxu1 %vm1380_vm3, %v1379_v50 }
 0x122   :  { %v1341_v58 = vpop.eup %1340  ;;  %v1164_v59 = vadd.f32 %v1163_v56, %v1162_v54  ;;  %v593_v60 = vadd.f32 %v1161_v53, %v175_v52  ;;  %v690_v61 = vpop.f32.mrb[21].mxu1 }
 0x123   :  { %v691_v63 = vpop.f32.mrb[22].mxu1  ;;  %v739_v0 = vpack.c.bf16 %v1341_v58, %v1339_v55  ;;  %v758_v51 = vpop.permute.xlu1 %757 }
 0x124   :  { %v689_v1 = vadd.f32 %v688_v57, %v593_v60  ;;  %v596_v2 = vadd.f32 %v1164_v59, %v180_v62  ;;  %v693_v3 = vpop.f32.mrb[23].mxu1  ;;  %v763_v52 = vpop.permute.xlu0 %762 }
 0x125   :  { %1204 = vmatprep.subr.bf16.mxu0 %v739_v0 }
 0x126   :  { %v692_v4 = vadd.f32 %v691_v63, %v596_v2  ;;  %v1165_v5 = vpop.f32.mrb[24].mxu0  ;;  %1205 = vmatpush3.bf16.msra.mxu0 %v739_v0  ;;  %1346 = vtanh.f32 %v689_v1 }
 0x127   :  { %v1166_v6 = vpop.f32.mrb[25].mxu0  ;;  %v768_v53 = vpop.permute.xlu1 %767 }
 0x128   :  { %1348 = vtanh.f32 %v692_v4  ;;  %v1167_v8 = vadd.f32 %v1166_v6, %v1165_v5  ;;  %v1168_v9 = vpop.f32.mrb[26].mxu0  ;;  %v1343_v10 = vpop.eup %1342 }
 0x129   :  { %v1169_v11 = vpop.f32.mrb[27].mxu0  ;;  %v696_v12 = vpop.f32.mrb[24].mxu1 }
 0x12a   :  { %v1345_v13 = vpop.eup %1344  ;;  %v1170_v14 = vadd.f32 %v1169_v11, %v1168_v9  ;;  %v601_v15 = vadd.f32 %v1167_v8, %v185_v7  ;;  %v698_v16 = vpop.f32.mrb[25].mxu1 }
 0x12b   :  { %v699_v18 = vpop.f32.mrb[26].mxu1  ;;  %v740_v19 = vpack.c.bf16 %v1345_v13, %v1343_v10  ;;  %v773_v54 = vpop.permute.xlu0 %772 }
 0x12c   :  { %v697_v20 = vadd.f32 %v696_v12, %v601_v15  ;;  %v604_v21 = vadd.f32 %v1170_v14, %v190_v17  ;;  %v701_v22 = vpop.f32.mrb[27].mxu1  ;;  %v778_v55 = vpop.permute.xlu1 %777 }
 0x12d   :  { %1206 = vmatprep.subr.bf16.mxu0 %v740_v19 }
 0x12e   :  { %v700_v23 = vadd.f32 %v699_v18, %v604_v21  ;;  %v1171_v24 = vpop.f32.mrb[28].mxu0  ;;  %1207 = vmatpush3.bf16.msra.mxu0 %v740_v19  ;;  %1350 = vtanh.f32 %v697_v20 }
 0x12f   :  { %v1172_v25 = vpop.f32.mrb[29].mxu0  ;;  %v783_v61 = vpop.permute.xlu0 %782 }
 0x130   :  { %1352 = vtanh.f32 %v700_v23  ;;  %v1173_v27 = vadd.f32 %v1172_v25, %v1171_v24  ;;  %v1174_v28 = vpop.f32.mrb[30].mxu0  ;;  %v1347_v29 = vpop.eup %1346 }
 0x131   :  { %v1175_v30 = vpop.f32.mrb[31].mxu0  ;;  %v704_v31 = vpop.f32.mrb[28].mxu1 }
 0x132   :  { %v1349_v32 = vpop.eup %1348  ;;  %v609_v33 = vadd.f32 %v1173_v27, %v195_v26  ;;  %v706_v34 = vpop.f32.mrb[29].mxu1 }
 0x133   :  { %v707_v35 = vpop.f32.mrb[30].mxu1  ;;  %v741_v36 = vpack.c.bf16 %v1349_v32, %v1347_v29  ;;  %v788_v0 = vpop.permute.xlu1 %787 }
 0x134   :  { %v705_v37 = vadd.f32 %v704_v31, %v609_v33  ;;  %v708_v38 = vpop.f32.mrb[31].mxu1  ;;  %v793_v3 = vpop.permute.xlu0 %792 }
 0x135   :  { %1208 = vmatprep.subr.bf16.mxu0 %v741_v36 }
 0x136   :  { %1354 = vtanh.f32 %v705_v37  ;;  %1209 = vmatpush3.bf16.msra.mxu0 %v741_v36 }
 0x137   :  { %v798_v6 = vpop.permute.xlu1 %797 }
 0x138   :  { %v1351_v39 = vpop.eup %1350  ;;  %v803_v24 = vpop.permute.xlu0 %802 }
 0x13a   :  { %v1353_v40 = vpop.eup %1352 }
 0x13b   :  { %v742_v41 = vpack.c.bf16 %v1353_v40, %v1351_v39  ;;  %v808_v16 = vpop.permute.xlu1 %807  ;;  %v1325_v39 = vld [vmem:[%s1735_s5] sm:$0x1f]  }
 0x13c   :  { %v965_v40 = vpop.permute.xlu0 %964 }
 0x13d   :  { %1210 = vmatprep.subr.bf16.mxu0 %v742_v41 }
 0x13e   :  { %1211 = vmatpush3.bf16.msra.mxu0 %v742_v41 }
 0x140   :  { %v1355_v42 = vpop.eup %1354 }
 0x141   :  { %v743_v43 = vpack.c.bf16 %v1355_v42, %v1355_v42 }
 0x143   :  { %1242 = vmatprep.subr.msk.bf16.mxu0 %vm857_vm2, %v743_v43  ;;  %v859_v44 = vsel %vm857_vm2, %v743_v43, 0 }
 0x144   :  { %1213 = vmatpush3.bf16.msra.mxu0 %v859_v44  ;;  %v970_v44 = vpop.permute.xlu1 %969 }
 0x147   :  { %1215 = vmatmul.mubr.msk.bf16.vlgmr.msra.gmra.mrb[32].mxu0 %vm838_vm1, %v1320_v45 }
 0x148   :  { %1218 = vmatprep.mubr.msk.bf16.mxu0 %vm838_vm1, %v1321_v46 }
 0x14f   :  { %1219 = vmatmul.mubr.msk.bf16.gmra.mrb[36].mxu0 %vm838_vm1, %v1322_v47 }
 0x150   :  { %1222 = vmatprep.mubr.msk.bf16.mxu0 %vm838_vm1, %v1323_v48 }
 0x157   :  { %1223 = vmatmul.mubr.msk.bf16.gmra.mrb[40].mxu0 %vm838_vm1, %v1324_v49 }
 0x21a   :  { %v1216_v56 = vpop.f32.mrb[32].mxu0 }
 0x21b   :  { %v904_v57 = vadd.f32 %v1216_v56, %v768_v53  ;;  %v895_v58 = vpop.f32.mrb[33].mxu0 }
 0x21c   :  { %v896_v59 = vadd.f32 %v895_v58, %v758_v51  ;;  %v1217_v60 = vpop.f32.mrb[34].mxu0 }
 0x21d   :  { %1356 = vtanh.f32 %v904_v57  ;;  %v907_v62 = vadd.f32 %v1217_v60, %v773_v54  ;;  %v898_v63 = vpop.f32.mrb[35].mxu0 }
 0x21e   :  { %1358 = vtanh.f32 %v896_v59  ;;  %v899_v1 = vadd.f32 %v898_v63, %v763_v52 }
 0x21f   :  { %1360 = vtanh.f32 %v907_v62 }
 0x220   :  { %1362 = vtanh.f32 %v899_v1 }
 0x222   :  { %v1220_v2 = vpop.f32.mrb[36].mxu0 }
 0x223   :  { %v920_v4 = vadd.f32 %v1220_v2, %v788_v0  ;;  %v911_v5 = vpop.f32.mrb[37].mxu0 }
 0x224   :  { %v912_v7 = vadd.f32 %v911_v5, %v778_v55  ;;  %v1221_v8 = vpop.f32.mrb[38].mxu0 }
 0x225   :  { %1364 = vtanh.f32 %v920_v4  ;;  %v923_v9 = vadd.f32 %v1221_v8, %v793_v3  ;;  %v914_v10 = vpop.f32.mrb[39].mxu0 }
 0x226   :  { %1366 = vtanh.f32 %v912_v7  ;;  %v915_v11 = vadd.f32 %v914_v10, %v783_v61 }
 0x227   :  { %v1357_v12 = vpop.eup %1356  ;;  %1368 = vtanh.f32 %v923_v9 }
 0x228   :  { %v1359_v13 = vpop.eup %1358  ;;  %1370 = vtanh.f32 %v915_v11 }
 0x229   :  { %v1361_v14 = vpop.eup %1360 }
 0x22a   :  { %v1363_v15 = vpop.eup %1362  ;;  %v1224_v17 = vpop.f32.mrb[40].mxu0  ;;  %v955_v18 = vpack.c.bf16 %v1361_v14, %v1357_v12 }
 0x22b   :  { %v936_v19 = vadd.f32 %v1224_v17, %v808_v16  ;;  %v927_v20 = vpop.f32.mrb[41].mxu0  ;;  %v954_v21 = vpack.c.bf16 %v1363_v15, %v1359_v13 }
 0x22c   :  { %v928_v22 = vadd.f32 %v927_v20, %v798_v6  ;;  %v1225_v23 = vpop.f32.mrb[42].mxu0 }
 0x22d   :  { %v930_v25 = vpop.f32.mrb[43].mxu0  ;;  %1227 = vmatpush3.bf16.msra.mxu1 %v954_v21  ;;  %1372 = vtanh.f32 %v936_v19 }
 0x22e   :  { %v931_v26 = vadd.f32 %v930_v25, %v803_v24  ;;  %1228 = vmatprep.subr.bf16.mxu1 %v1379_v50  ;;  %1374 = vtanh.f32 %v928_v22 }
 0x22f   :  { %v1365_v27 = vpop.eup %1364 }
 0x230   :  { %v1367_v28 = vpop.eup %1366  ;;  %1376 = vtanh.f32 %v931_v26 }
 0x231   :  { %v1369_v29 = vpop.eup %1368  ;;  %1229 = vmatpush3.bf16.msra.mxu1 %v955_v18 }
 0x232   :  { %v1371_v30 = vpop.eup %1370  ;;  %1230 = vmatprep.subr.bf16.mxu1 %v1379_v50  ;;  %v957_v31 = vpack.c.bf16 %v1369_v29, %v1365_v27 }
 0x233   :  { %v956_v32 = vpack.c.bf16 %v1371_v30, %v1367_v28 }
 0x235   :  { %1231 = vmatpush3.bf16.msra.mxu1 %v956_v32 }
 0x236   :  { %1232 = vmatprep.subr.bf16.mxu1 %v1379_v50 }
 0x237   :  { %v1373_v33 = vpop.eup %1372 }
 0x238   :  { %v1375_v34 = vpop.eup %1374  ;;  %v959_v37 = vpack.c.bf16 %v1373_v33, %v1373_v33 }
 0x239   :  { %1233 = vmatpush3.bf16.msra.mxu1 %v957_v31 }
 0x23a   :  { %v1377_v35 = vpop.eup %1376  ;;  %1234 = vmatprep.subr.bf16.mxu1 %v1379_v50  ;;  %v983_v38 = vsel %vm981_vm4, %v959_v37, 0 }
 0x23b   :  { %v958_v36 = vpack.c.bf16 %v1377_v35, %v1375_v34 }
 0x23d   :  { %1235 = vmatpush3.bf16.msra.mxu1 %v958_v36 }
 0x23e   :  { %1236 = vmatprep.subr.bf16.mxu1 %v1379_v50 }
 0x241   :  { %1237 = vmatpush3.bf16.msra.mxu1 %v983_v38 }
 0x244   :  { %1239 = vmatmul.mubr.msk.bf16.vlgmr.msra.gmra.mrb[32].mxu1 %vm977_vm5, %v1325_v39 }
 0x317   :  { %v1019_v41 = vpop.f32.mrb[32].mxu1 }
 0x318   :  { %v1020_v42 = vadd.f32 %v1019_v41, %v965_v40  ;;  %v1240_v43 = vpop.f32.mrb[33].mxu1 }
 0x319   :  { %v1022_v45 = vpop.f32.mrb[34].mxu1 }
 0x31a   :  { %1027 = vst.msk [vmem:[%s1736_s7] sm:$0xff] %vm1026_vm6, %v1020_v42  ;;  %v1023_v46 = vadd.f32 %v1022_v45, %v970_v44  ;;  %v1241_v47 = vpop.f32.mrb[35].mxu1 }
 0x31c   :  { %1029 = vst.msk [vmem:[%s1736_s7 + $0x8] sm:$0x3] %vm1028_vm7, %v1023_v46 }

</bundles_post_ra>
